<compile_context>
chip_gen: v7x
topology: tpu7x:2x2x1
jax: 0.10.0
libtpu: 0.0.40
codegen_flags: <defaults>
</compile_context>

<pallas_src>
from functools import partial

import jax
import jax.numpy as jnp
from jax.experimental import pallas as pl
from jax.experimental.pallas import tpu as pltpu

EPS = 1e-5  # nn.LayerNorm default


# ---------------------------------------------------------------- kernel math

def _layernorm(x, g, b):
    """One-pass LayerNorm over the last axis (f32 stats, var clamped >= 0)."""
    inv_d = 1.0 / x.shape[-1]
    s = jnp.sum(x, axis=-1, keepdims=True)
    s2 = jnp.sum(x * x, axis=-1, keepdims=True)
    mu = s * inv_d
    var = jnp.maximum(s2 * inv_d - mu * mu, 0.0)
    return (x - mu) * jax.lax.rsqrt(var + EPS) * g + b


def _gelu_tanh(x):
    # tanh-approximate GELU: tanh goes to the EUP slot (cheap alongside
    # VALU/MXU). Deviates from PyTorch's exact erf GELU by <~3e-3 per element.
    c = 0.7978845608028654  # sqrt(2/pi)
    return 0.5 * x * (1.0 + jnp.tanh(c * (x + 0.044715 * x * x * x)))


# -------------------------------------------------------------------- kernel

def transformer_kernel(x_ref, ag_ref, ab_ref, wqkv_ref, wout_ref, bout_ref,
                       fg_ref, fb_ref, w1_ref, w2_ref, gfin_ref, bfin_ref,
                       o_ref, x_scr, *, heads, dim_head, bt, seq):
    layer = pl.program_id(1)
    n_layers = pl.num_programs(1)
    inner = heads * dim_head

    # Load the batch tile from HBM once; it stays resident in VMEM afterwards.
    @pl.when(layer == 0)
    def _():
        x_scr[...] = x_ref[...].astype(jnp.float32)

    x = x_scr[...]                                            # (bt*seq, D) f32

    # ---------------- attention + residual ----------------
    xn = _layernorm(x, ag_ref[0], ab_ref[0])
    qkv = jnp.dot(xn.astype(jnp.bfloat16), wqkv_ref[0],
                  preferred_element_type=jnp.float32)         # (bt*seq, 3*inner)
    qkv = qkv.astype(jnp.bfloat16)   # q scale already folded into wqkv columns

    # Value-level head split (static slices + stack): no scratch round trips,
    # no masked narrow VMEM stores. Result: (bt*heads, seq, dim_head) bf16.
    q_parts, k_parts, v_parts = [], [], []
    for b in range(bt):
        rows = qkv[b * seq:(b + 1) * seq]
        for h in range(heads):
            lo = h * dim_head
            q_parts.append(rows[:, lo:lo + dim_head])
            k_parts.append(rows[:, inner + lo:inner + lo + dim_head])
            v_parts.append(rows[:, 2 * inner + lo:2 * inner + lo + dim_head])
    qh = jnp.stack(q_parts, axis=0)
    kh = jnp.stack(k_parts, axis=0)
    vh = jnp.stack(v_parts, axis=0)

    # All (batch, head) pairs in one batched MXU contraction.
    sim = jnp.einsum('bid,bjd->bij', qh, kh,
                     preferred_element_type=jnp.float32)      # (bt*heads, seq, seq)
    sim = sim - jnp.max(sim, axis=-1, keepdims=True)
    p = jnp.exp(sim)
    attn = p * pl.reciprocal(jnp.sum(p, axis=-1, keepdims=True), approx=True)
    outh = jnp.einsum('bij,bjd->bid', attn.astype(jnp.bfloat16), vh,
                      preferred_element_type=jnp.float32)     # (bt*heads, seq, dh)
    outh = outh.astype(jnp.bfloat16)   # merge buffer in bf16 (half the bytes)

    # (bt*heads, seq, dh) -> (bt*seq, inner): value-level concatenation, then a
    # single full-depth output projection matmul.
    merged = jnp.concatenate(
        [jnp.concatenate([outh[b * heads + h] for h in range(heads)], axis=-1)
         for b in range(bt)], axis=0)                          # (bt*seq, inner) bf16
    y = jnp.dot(merged, wout_ref[0],
                preferred_element_type=jnp.float32) + bout_ref[0]
    x = x + y                                                  # residual

    # ---------------- feed-forward + residual ----------------
    xn = _layernorm(x, fg_ref[0], fb_ref[0])
    hmid = jnp.dot(xn.astype(jnp.bfloat16), w1_ref[0],
                   preferred_element_type=jnp.float32)         # (bt*seq, hidden)
    hmid = _gelu_tanh(hmid)
    y = jnp.dot(hmid.astype(jnp.bfloat16), w2_ref[0],
                preferred_element_type=jnp.float32)
    x = x + y                                                  # residual

    x_scr[...] = x

    # ---------------- final LayerNorm, single HBM writeback ----------------
    @pl.when(layer == n_layers - 1)
    def _():
        o_ref[...] = _layernorm(x, gfin_ref[0], bfin_ref[0]).astype(o_ref.dtype)


# ------------------------------------------------------------------ wrapper

def _vmem_limit_bytes(rows, seq, d, inner, hidden, heads, dim_head, bt):
    """Generous estimate of scoped VMEM needed: I/O + double-buffered weights
    + resident activation scratch + in-kernel temporaries, with headroom."""
    f32, bf16 = 4, 2
    io = 2 * 2 * rows * d * f32
    per_layer_w = (6 * d * f32
                   + d * 3 * inner * bf16 + inner * d * bf16
                   + d * hidden * bf16 + hidden * d * bf16)
    weights = 2 * per_layer_w                       # double buffering
    scratch = rows * d * f32
    tmp = (rows * 3 * inner * (f32 + bf16)
           + 3 * bt * heads * seq * dim_head * bf16
           + 3 * bt * heads * seq * seq * f32       # sim / p / attn
           + rows * inner * (f32 + bf16)
           + rows * hidden * (2 * f32 + bf16)
           + 4 * rows * d * f32)
    need = int(1.5 * (io + weights + scratch + tmp))
    # >= 32 MiB (safe on every generation), capped at ~56 MiB usable on v7x.
    return max(32 * 1024 * 1024, min(need, 56 * 1024 * 1024))


def transformer_forward(x, kparams, *, heads, dim_head, batch_tile=None):
    """kparams = prepare_kernel_params(init_transformer_params(...))."""
    B, N, D = x.shape
    L = kparams["wqkv"].shape[0]
    inner = heads * dim_head
    hidden = kparams["w1"].shape[-1]

    bt = B if batch_tile is None else batch_tile
    assert B % bt == 0, "batch must be divisible by batch_tile"
    nb = B // bt
    rows = bt * N

    # Flatten (B, N, D) -> (B*N, D) on the wrapper side (free XLA reshape) so
    # the kernel works on lane-dense 2D slabs with no in-kernel reshapes.
    x2 = x.reshape(B * N, D)

    def layer_spec(block):
        nz = (0,) * (len(block) - 1)
        return pl.BlockSpec(block, lambda b, l, _nz=nz: (l,) + _nz)

    def shared_spec(block):
        nz = (0,) * len(block)
        return pl.BlockSpec(block, lambda b, l, _nz=nz: _nz)

    kernel = partial(transformer_kernel, heads=heads, dim_head=dim_head,
                     bt=bt, seq=N)

    out2 = pl.pallas_call(
        kernel,
        out_shape=jax.ShapeDtypeStruct((B * N, D), x.dtype),
        grid=(nb, L),
        in_specs=[
            pl.BlockSpec((rows, D), lambda b, l: (b, 0)),      # x (batch tile)
            layer_spec((1, 1, D)),                             # attn LN gamma
            layer_spec((1, 1, D)),                             # attn LN beta
            layer_spec((1, D, 3 * inner)),                     # to_qkv (q prescaled)
            layer_spec((1, inner, D)),                         # to_out weight
            layer_spec((1, 1, D)),                             # to_out bias
            layer_spec((1, 1, D)),                             # ff LN gamma
            layer_spec((1, 1, D)),                             # ff LN beta
            layer_spec((1, D, hidden)),                        # ff w1
            layer_spec((1, hidden, D)),                        # ff w2
            shared_spec((1, 1, D)),                            # final LN gamma
            shared_spec((1, 1, D)),                            # final LN beta
        ],
        out_specs=pl.BlockSpec((rows, D), lambda b, l: (b, 0)),
        scratch_shapes=[pltpu.VMEM((rows, D), jnp.float32)],   # resident x
        compiler_params=pltpu.CompilerParams(
            dimension_semantics=("parallel", "arbitrary"),
            vmem_limit_bytes=_vmem_limit_bytes(rows, N, D, inner, hidden,
                                               heads, dim_head, bt)),
    )(x2, kparams["attn_g"], kparams["attn_b"], kparams["wqkv"],
      kparams["wout"], kparams["bout"], kparams["ff_g"], kparams["ff_b"],
      kparams["w1"], kparams["w2"], kparams["final_g"], kparams["final_b"])
    return out2.reshape(B, N, D)


# --------------------------------------------------------------- parameters

def init_transformer_params(key, dim, layers, dim_head, heads, ff_mult):
    """PyTorch-style parameterization (scale NOT folded; LN params 1-D)."""
    inner = dim_head * heads
    hidden = dim * ff_mult
    k1, k2, k3, k4, k5 = jax.random.split(key, 5)
    return dict(
        attn_g=jnp.ones((layers, dim), jnp.float32),
        attn_b=jnp.zeros((layers, dim), jnp.float32),
        wqkv=(0.05 * jax.random.normal(k1, (layers, dim, 3 * inner),
                                       jnp.float32)).astype(jnp.bfloat16),
        wout=(0.05 * jax.random.normal(k2, (layers, inner, dim),
                                       jnp.float32)).astype(jnp.bfloat16),
        bout=0.05 * jax.random.normal(k3, (layers, dim), jnp.float32),
        ff_g=jnp.ones((layers, dim), jnp.float32),
        ff_b=jnp.zeros((layers, dim), jnp.float32),
        w1=(0.05 * jax.random.normal(k4, (layers, dim, hidden),
                                     jnp.float32)).astype(jnp.bfloat16),
        w2=(0.05 * jax.random.normal(k5, (layers, hidden, dim),
                                     jnp.float32)).astype(jnp.bfloat16),
        final_g=jnp.ones((dim,), jnp.float32),
        final_b=jnp.zeros((dim,), jnp.float32),
    )


def prepare_kernel_params(params, *, dim_head):
    """One-time weight transform for the kernel: fold dim_head**-0.5 into the
    q-columns of wqkv, and reshape small per-layer vectors to (L, 1, D) so
    every BlockSpec's last two block dims equal the full array dims."""
    scale = dim_head ** -0.5
    wqkv = params["wqkv"].astype(jnp.float32)
    inner = wqkv.shape[-1] // 3
    wqkv = wqkv.at[..., :inner].multiply(scale).astype(jnp.bfloat16)
    L, D = params["attn_g"].shape
    r3 = lambda a: a.reshape(L, 1, D)
    return dict(
        attn_g=r3(params["attn_g"]), attn_b=r3(params["attn_b"]),
        wqkv=wqkv, wout=params["wout"], bout=r3(params["bout"]),
        ff_g=r3(params["ff_g"]), ff_b=r3(params["ff_b"]),
        w1=params["w1"], w2=params["w2"],
        final_g=params["final_g"].reshape(1, 1, D),
        final_b=params["final_b"].reshape(1, 1, D),
    )


# ------------------------------------------------------------ JAX reference

def _ref_ln(x, g, b):
    mu = jnp.mean(x, axis=-1, keepdims=True)
    var = jnp.mean((x - mu) ** 2, axis=-1, keepdims=True)
    return (x - mu) / jnp.sqrt(var + EPS) * g + b


def reference_forward(x, params, *, heads, dim_head):
    B, N, D = x.shape
    L = params["wqkv"].shape[0]
    inner = heads * dim_head
    scale = dim_head ** -0.5
    for l in range(L):
        xn = _ref_ln(x, params["attn_g"][l], params["attn_b"][l])
        qkv = xn @ params["wqkv"][l].astype(jnp.float32)
        q, k, v = jnp.split(qkv, 3, axis=-1)

        def to_heads(t):
            return t.reshape(B, N, heads, dim_head).transpose(0, 2, 1, 3)

        q, k, v = map(to_heads, (q, k, v))
        q = q * scale
        sim = jnp.einsum("bhid,bhjd->bhij", q, k)
        sim = sim - jnp.max(sim, axis=-1, keepdims=True)
        attn = jax.nn.softmax(sim, axis=-1)
        out = jnp.einsum("bhij,bhjd->bhid", attn, v)
        out = out.transpose(0, 2, 1, 3).reshape(B, N, inner)
        x = out @ params["wout"][l].astype(jnp.float32) + params["bout"][l] + x

        xn = _ref_ln(x, params["ff_g"][l], params["ff_b"][l])
        h = jax.nn.gelu(xn @ params["w1"][l].astype(jnp.float32),
                        approximate=False)
        x = h @ params["w2"][l].astype(jnp.float32) + x
    return _ref_ln(x, params["final_g"], params["final_b"])


# -------------------------------------------------------------------- main

if __name__ == "__main__":
    dim, layers, dim_head, heads, ff_mult = 32, 2, 8, 4, 4
    B, N = 2, 8

    key = jax.random.PRNGKey(0)
    kx, kp = jax.random.split(key)
    x = jax.random.normal(kx, (B, N, dim), jnp.float32)
    params = init_transformer_params(kp, dim, layers, dim_head, heads, ff_mult)
    kparams = prepare_kernel_params(params, dim_head=dim_head)

    out = transformer_forward(x, kparams, heads=heads, dim_head=dim_head)
    out = jax.block_until_ready(out)

    ref = reference_forward(x, params, heads=heads, dim_head=dim_head)
    assert out.shape == (B, N, dim)
    err = float(jnp.max(jnp.abs(out - ref)))
    # bf16 matmul inputs + tanh GELU + approx reciprocal -> looser tolerance
    # than pure f32 / exact-erf reference.
    assert err < 5e-2, f"mismatch vs JAX reference: {err}"

    print("KERNEL_OK")
</pallas_src>

<mosaic_0001>
module attributes {stable_mosaic.version = 11 : i64} {
  func.func @transformer_kernel(%arg0: i32, %arg1: i32, %arg2: memref<16x32xf32, #tpu.memory_space<vmem>>, %arg3: memref<1x1x32xf32, #tpu.memory_space<vmem>>, %arg4: memref<1x1x32xf32, #tpu.memory_space<vmem>>, %arg5: memref<1x32x96xbf16, #tpu.memory_space<vmem>>, %arg6: memref<1x32x32xbf16, #tpu.memory_space<vmem>>, %arg7: memref<1x1x32xf32, #tpu.memory_space<vmem>>, %arg8: memref<1x1x32xf32, #tpu.memory_space<vmem>>, %arg9: memref<1x1x32xf32, #tpu.memory_space<vmem>>, %arg10: memref<1x32x128xbf16, #tpu.memory_space<vmem>>, %arg11: memref<1x128x32xbf16, #tpu.memory_space<vmem>>, %arg12: memref<1x1x32xf32, #tpu.memory_space<vmem>>, %arg13: memref<1x1x32xf32, #tpu.memory_space<vmem>>, %arg14: memref<16x32xf32, #tpu.memory_space<vmem>>, %arg15: memref<16x32xf32, #tpu.memory_space<vmem>>) attributes {dimension_semantics = [#tpu.dimension_semantics<parallel>, #tpu.dimension_semantics<arbitrary>], iteration_bounds = array<i64: 1, 2>, scalar_prefetch = 0 : i64, scratch_operands = 1 : i64, tpu.core_type = #tpu.core_type<tc>, window_params = [{transform_indices = @transform_0, window_bounds = array<i64: 16, 32>}, {transform_indices = @transform_1, window_bounds = array<i64: 1, 1, 32>}, {transform_indices = @transform_2, window_bounds = array<i64: 1, 1, 32>}, {transform_indices = @transform_3, window_bounds = array<i64: 1, 32, 96>}, {transform_indices = @transform_4, window_bounds = array<i64: 1, 32, 32>}, {transform_indices = @transform_5, window_bounds = array<i64: 1, 1, 32>}, {transform_indices = @transform_6, window_bounds = array<i64: 1, 1, 32>}, {transform_indices = @transform_7, window_bounds = array<i64: 1, 1, 32>}, {transform_indices = @transform_8, window_bounds = array<i64: 1, 32, 128>}, {transform_indices = @transform_9, window_bounds = array<i64: 1, 128, 32>}, {pipeline_mode = #tpu.pipeline_mode<synchronous>, transform_indices = @transform_10, window_bounds = array<i64: 1, 1, 32>}, {pipeline_mode = #tpu.pipeline_mode<synchronous>, transform_indices = @transform_11, window_bounds = array<i64: 1, 1, 32>}, {transform_indices = @transform_12, window_bounds = array<i64: 16, 32>}]} {
    %c0_i32 = arith.constant 0 : i32
    %0 = arith.cmpi eq, %arg1, %c0_i32 : i32
    %1 = arith.extui %0 : i1 to i32
    %c0_i32_0 = arith.constant 0 : i32
    %2 = arith.cmpi ne, %1, %c0_i32_0 : i32
    scf.if %2 {
      %c0_55 = arith.constant 0 : index
      %c0_56 = arith.constant 0 : index
      %185 = vector.load %arg2[%c0_55, %c0_56] : memref<16x32xf32, #tpu.memory_space<vmem>>, vector<16x32xf32>
      %c0_57 = arith.constant 0 : index
      %c0_58 = arith.constant 0 : index
      %186 = vector.load %arg15[%c0_57, %c0_58] : memref<16x32xf32, #tpu.memory_space<vmem>>, vector<16x32xf32>
      tpu.vector_store %arg15[%c0_57, %c0_58], %185 {strides = array<i32>} : memref<16x32xf32, #tpu.memory_space<vmem>>, vector<16x32xf32>,
    } else {
    }
    %c0 = arith.constant 0 : index
    %c0_1 = arith.constant 0 : index
    %3 = vector.load %arg15[%c0, %c0_1] : memref<16x32xf32, #tpu.memory_space<vmem>>, vector<16x32xf32>
    %c0_2 = arith.constant 0 : index
    %c0_3 = arith.constant 0 : index
    %c0_4 = arith.constant 0 : index
    %4 = vector.load %arg3[%c0_2, %c0_3, %c0_4] : memref<1x1x32xf32, #tpu.memory_space<vmem>>, vector<1x1x32xf32>
    %5 = vector.shape_cast %4 : vector<1x1x32xf32> to vector<1x32xf32>
    %c0_5 = arith.constant 0 : index
    %c0_6 = arith.constant 0 : index
    %c0_7 = arith.constant 0 : index
    %6 = vector.load %arg4[%c0_5, %c0_6, %c0_7] : memref<1x1x32xf32, #tpu.memory_space<vmem>>, vector<1x1x32xf32>
    %7 = vector.shape_cast %6 : vector<1x1x32xf32> to vector<1x32xf32>
    %cst = arith.constant dense<0.000000e+00> : vector<16xf32>
    %8 = vector.multi_reduction <add>, %3, %cst [1] : vector<16x32xf32> to vector<16xf32>
    %9 = vector.shape_cast %8 : vector<16xf32> to vector<16x1xf32>
    %10 = arith.mulf %3, %3 : vector<16x32xf32>
    %cst_8 = arith.constant dense<0.000000e+00> : vector<16xf32>
    %11 = vector.multi_reduction <add>, %10, %cst_8 [1] : vector<16x32xf32> to vector<16xf32>
    %12 = vector.shape_cast %11 : vector<16xf32> to vector<16x1xf32>
    %cst_9 = arith.constant 3.125000e-02 : f32
    %13 = vector.broadcast %cst_9 : f32 to vector<16x1xf32>
    %14 = arith.mulf %9, %13 : vector<16x1xf32>
    %cst_10 = arith.constant 3.125000e-02 : f32
    %15 = vector.broadcast %cst_10 : f32 to vector<16x1xf32>
    %16 = arith.mulf %12, %15 : vector<16x1xf32>
    %17 = arith.mulf %14, %14 : vector<16x1xf32>
    %18 = arith.subf %16, %17 : vector<16x1xf32>
    %cst_11 = arith.constant 0.000000e+00 : f32
    %19 = vector.broadcast %cst_11 : f32 to vector<16x1xf32>
    %20 = arith.maximumf %18, %19 : vector<16x1xf32>
    %21 = vector.broadcast %14 : vector<16x1xf32> to vector<16x32xf32>
    %22 = arith.subf %3, %21 : vector<16x32xf32>
    %cst_12 = arith.constant 9.99999974E-6 : f32
    %23 = vector.broadcast %cst_12 : f32 to vector<16x1xf32>
    %24 = arith.addf %20, %23 : vector<16x1xf32>
    %25 = math.rsqrt %24 : vector<16x1xf32>
    %26 = vector.broadcast %25 : vector<16x1xf32> to vector<16x32xf32>
    %27 = arith.mulf %22, %26 : vector<16x32xf32>
    %28 = vector.broadcast %5 : vector<1x32xf32> to vector<16x32xf32>
    %29 = arith.mulf %27, %28 : vector<16x32xf32>
    %30 = vector.broadcast %7 : vector<1x32xf32> to vector<16x32xf32>
    %31 = arith.addf %29, %30 : vector<16x32xf32>
    %32 = arith.truncf %31 : vector<16x32xf32> to vector<16x32xbf16>
    %c0_13 = arith.constant 0 : index
    %c0_14 = arith.constant 0 : index
    %c0_15 = arith.constant 0 : index
    %33 = vector.load %arg5[%c0_13, %c0_14, %c0_15] : memref<1x32x96xbf16, #tpu.memory_space<vmem>>, vector<1x32x96xbf16>
    %34 = vector.shape_cast %33 : vector<1x32x96xbf16> to vector<32x96xbf16>
    %cst_16 = arith.constant dense<0.000000e+00> : vector<16x96xf32>
    %35 = tpu.matmul %32, %34, %cst_16 {dimension_numbers = #tpu.dot_dimension_numbers<[1], [0], [0], [1], [0, 0, 1, 1], [], []>} : vector<16x32xbf16>, vector<32x96xbf16>, vector<16x96xf32> -> vector<16x96xf32>
    %36 = arith.truncf %35 : vector<16x96xf32> to vector<16x96xbf16>
    %37 = vector.extract_strided_slice %36 {offsets = [0, 0], sizes = [8, 96], strides = [1, 1]} : vector<16x96xbf16> to vector<8x96xbf16>
    %38 = vector.extract_strided_slice %37 {offsets = [0, 0], sizes = [8, 8], strides = [1, 1]} : vector<8x96xbf16> to vector<8x8xbf16>
    %39 = vector.extract_strided_slice %37 {offsets = [0, 32], sizes = [8, 8], strides = [1, 1]} : vector<8x96xbf16> to vector<8x8xbf16>
    %40 = vector.extract_strided_slice %37 {offsets = [0, 64], sizes = [8, 8], strides = [1, 1]} : vector<8x96xbf16> to vector<8x8xbf16>
    %41 = vector.extract_strided_slice %37 {offsets = [0, 8], sizes = [8, 8], strides = [1, 1]} : vector<8x96xbf16> to vector<8x8xbf16>
    %42 = vector.extract_strided_slice %37 {offsets = [0, 40], sizes = [8, 8], strides = [1, 1]} : vector<8x96xbf16> to vector<8x8xbf16>
    %43 = vector.extract_strided_slice %37 {offsets = [0, 72], sizes = [8, 8], strides = [1, 1]} : vector<8x96xbf16> to vector<8x8xbf16>
    %44 = vector.extract_strided_slice %37 {offsets = [0, 16], sizes = [8, 8], strides = [1, 1]} : vector<8x96xbf16> to vector<8x8xbf16>
    %45 = vector.extract_strided_slice %37 {offsets = [0, 48], sizes = [8, 8], strides = [1, 1]} : vector<8x96xbf16> to vector<8x8xbf16>
    %46 = vector.extract_strided_slice %37 {offsets = [0, 80], sizes = [8, 8], strides = [1, 1]} : vector<8x96xbf16> to vector<8x8xbf16>
    %47 = vector.extract_strided_slice %37 {offsets = [0, 24], sizes = [8, 8], strides = [1, 1]} : vector<8x96xbf16> to vector<8x8xbf16>
    %48 = vector.extract_strided_slice %37 {offsets = [0, 56], sizes = [8, 8], strides = [1, 1]} : vector<8x96xbf16> to vector<8x8xbf16>
    %49 = vector.extract_strided_slice %37 {offsets = [0, 88], sizes = [8, 8], strides = [1, 1]} : vector<8x96xbf16> to vector<8x8xbf16>
    %50 = vector.extract_strided_slice %36 {offsets = [8, 0], sizes = [8, 96], strides = [1, 1]} : vector<16x96xbf16> to vector<8x96xbf16>
    %51 = vector.extract_strided_slice %50 {offsets = [0, 0], sizes = [8, 8], strides = [1, 1]} : vector<8x96xbf16> to vector<8x8xbf16>
    %52 = vector.extract_strided_slice %50 {offsets = [0, 32], sizes = [8, 8], strides = [1, 1]} : vector<8x96xbf16> to vector<8x8xbf16>
    %53 = vector.extract_strided_slice %50 {offsets = [0, 64], sizes = [8, 8], strides = [1, 1]} : vector<8x96xbf16> to vector<8x8xbf16>
    %54 = vector.extract_strided_slice %50 {offsets = [0, 8], sizes = [8, 8], strides = [1, 1]} : vector<8x96xbf16> to vector<8x8xbf16>
    %55 = vector.extract_strided_slice %50 {offsets = [0, 40], sizes = [8, 8], strides = [1, 1]} : vector<8x96xbf16> to vector<8x8xbf16>
    %56 = vector.extract_strided_slice %50 {offsets = [0, 72], sizes = [8, 8], strides = [1, 1]} : vector<8x96xbf16> to vector<8x8xbf16>
    %57 = vector.extract_strided_slice %50 {offsets = [0, 16], sizes = [8, 8], strides = [1, 1]} : vector<8x96xbf16> to vector<8x8xbf16>
    %58 = vector.extract_strided_slice %50 {offsets = [0, 48], sizes = [8, 8], strides = [1, 1]} : vector<8x96xbf16> to vector<8x8xbf16>
    %59 = vector.extract_strided_slice %50 {offsets = [0, 80], sizes = [8, 8], strides = [1, 1]} : vector<8x96xbf16> to vector<8x8xbf16>
    %60 = vector.extract_strided_slice %50 {offsets = [0, 24], sizes = [8, 8], strides = [1, 1]} : vector<8x96xbf16> to vector<8x8xbf16>
    %61 = vector.extract_strided_slice %50 {offsets = [0, 56], sizes = [8, 8], strides = [1, 1]} : vector<8x96xbf16> to vector<8x8xbf16>
    %62 = vector.extract_strided_slice %50 {offsets = [0, 88], sizes = [8, 8], strides = [1, 1]} : vector<8x96xbf16> to vector<8x8xbf16>
    %63 = vector.shape_cast %38 : vector<8x8xbf16> to vector<1x8x8xbf16>
    %64 = vector.shape_cast %41 : vector<8x8xbf16> to vector<1x8x8xbf16>
    %65 = vector.shape_cast %44 : vector<8x8xbf16> to vector<1x8x8xbf16>
    %66 = vector.shape_cast %47 : vector<8x8xbf16> to vector<1x8x8xbf16>
    %67 = vector.shape_cast %51 : vector<8x8xbf16> to vector<1x8x8xbf16>
    %68 = vector.shape_cast %54 : vector<8x8xbf16> to vector<1x8x8xbf16>
    %69 = vector.shape_cast %57 : vector<8x8xbf16> to vector<1x8x8xbf16>
    %70 = vector.shape_cast %60 : vector<8x8xbf16> to vector<1x8x8xbf16>
    %71 = tpu.concatenate %63, %64, %65, %66, %67, %68, %69, %70 in 0 : vector<1x8x8xbf16>, vector<1x8x8xbf16>, vector<1x8x8xbf16>, vector<1x8x8xbf16>, vector<1x8x8xbf16>, vector<1x8x8xbf16>, vector<1x8x8xbf16>, vector<1x8x8xbf16> -> vector<8x8x8xbf16>
    %72 = vector.shape_cast %39 : vector<8x8xbf16> to vector<1x8x8xbf16>
    %73 = vector.shape_cast %42 : vector<8x8xbf16> to vector<1x8x8xbf16>
    %74 = vector.shape_cast %45 : vector<8x8xbf16> to vector<1x8x8xbf16>
    %75 = vector.shape_cast %48 : vector<8x8xbf16> to vector<1x8x8xbf16>
    %76 = vector.shape_cast %52 : vector<8x8xbf16> to vector<1x8x8xbf16>
    %77 = vector.shape_cast %55 : vector<8x8xbf16> to vector<1x8x8xbf16>
    %78 = vector.shape_cast %58 : vector<8x8xbf16> to vector<1x8x8xbf16>
    %79 = vector.shape_cast %61 : vector<8x8xbf16> to vector<1x8x8xbf16>
    %80 = tpu.concatenate %72, %73, %74, %75, %76, %77, %78, %79 in 0 : vector<1x8x8xbf16>, vector<1x8x8xbf16>, vector<1x8x8xbf16>, vector<1x8x8xbf16>, vector<1x8x8xbf16>, vector<1x8x8xbf16>, vector<1x8x8xbf16>, vector<1x8x8xbf16> -> vector<8x8x8xbf16>
    %81 = vector.shape_cast %40 : vector<8x8xbf16> to vector<1x8x8xbf16>
    %82 = vector.shape_cast %43 : vector<8x8xbf16> to vector<1x8x8xbf16>
    %83 = vector.shape_cast %46 : vector<8x8xbf16> to vector<1x8x8xbf16>
    %84 = vector.shape_cast %49 : vector<8x8xbf16> to vector<1x8x8xbf16>
    %85 = vector.shape_cast %53 : vector<8x8xbf16> to vector<1x8x8xbf16>
    %86 = vector.shape_cast %56 : vector<8x8xbf16> to vector<1x8x8xbf16>
    %87 = vector.shape_cast %59 : vector<8x8xbf16> to vector<1x8x8xbf16>
    %88 = vector.shape_cast %62 : vector<8x8xbf16> to vector<1x8x8xbf16>
    %89 = tpu.concatenate %81, %82, %83, %84, %85, %86, %87, %88 in 0 : vector<1x8x8xbf16>, vector<1x8x8xbf16>, vector<1x8x8xbf16>, vector<1x8x8xbf16>, vector<1x8x8xbf16>, vector<1x8x8xbf16>, vector<1x8x8xbf16>, vector<1x8x8xbf16> -> vector<8x8x8xbf16>
    "tpu.trace_start"() <{level = 10 : i32, message = "bid,bjd->bij"}> : () -> ()
    %cst_17 = arith.constant dense<0.000000e+00> : vector<8x8x8xf32>
    %90 = tpu.matmul %71, %80, %cst_17 {dimension_numbers = #tpu.dot_dimension_numbers<[2], [2], [1], [1], [0, 0, 0, 1, 1, 1], [0], [0]>} : vector<8x8x8xbf16>, vector<8x8x8xbf16>, vector<8x8x8xf32> -> vector<8x8x8xf32>
    "tpu.trace_stop"() : () -> ()
    %cst_18 = arith.constant dense<0xFF800000> : vector<8x8xf32>
    %91 = vector.multi_reduction <maximumf>, %90, %cst_18 [2] : vector<8x8x8xf32> to vector<8x8xf32>
    %92 = vector.shape_cast %91 : vector<8x8xf32> to vector<8x8x1xf32>
    %93 = vector.broadcast %92 : vector<8x8x1xf32> to vector<8x8x8xf32>
    %94 = arith.subf %90, %93 : vector<8x8x8xf32>
    %95 = math.exp %94 : vector<8x8x8xf32>
    %cst_19 = arith.constant dense<0.000000e+00> : vector<8x8xf32>
    %96 = vector.multi_reduction <add>, %95, %cst_19 [2] : vector<8x8x8xf32> to vector<8x8xf32>
    %97 = vector.shape_cast %96 : vector<8x8xf32> to vector<8x8x1xf32>
    %98 = tpu.reciprocal %97 {approx = true} : vector<8x8x1xf32> -> vector<8x8x1xf32>
    %99 = vector.broadcast %98 : vector<8x8x1xf32> to vector<8x8x8xf32>
    %100 = arith.mulf %95, %99 : vector<8x8x8xf32>
    %101 = arith.truncf %100 : vector<8x8x8xf32> to vector<8x8x8xbf16>
    "tpu.trace_start"() <{level = 10 : i32, message = "bij,bjd->bid"}> : () -> ()
    %cst_20 = arith.constant dense<0.000000e+00> : vector<8x8x8xf32>
    %102 = tpu.matmul %101, %89, %cst_20 {dimension_numbers = #tpu.dot_dimension_numbers<[2], [1], [1], [2], [0, 0, 0, 1, 1, 2], [0], [0]>} : vector<8x8x8xbf16>, vector<8x8x8xbf16>, vector<8x8x8xf32> -> vector<8x8x8xf32>
    "tpu.trace_stop"() : () -> ()
    %103 = arith.truncf %102 : vector<8x8x8xf32> to vector<8x8x8xbf16>
    %104 = vector.extract_strided_slice %103 {offsets = [0, 0, 0], sizes = [1, 8, 8], strides = [1, 1, 1]} : vector<8x8x8xbf16> to vector<1x8x8xbf16>
    %105 = vector.shape_cast %104 : vector<1x8x8xbf16> to vector<8x8xbf16>
    %106 = vector.extract_strided_slice %103 {offsets = [1, 0, 0], sizes = [1, 8, 8], strides = [1, 1, 1]} : vector<8x8x8xbf16> to vector<1x8x8xbf16>
    %107 = vector.shape_cast %106 : vector<1x8x8xbf16> to vector<8x8xbf16>
    %108 = vector.extract_strided_slice %103 {offsets = [2, 0, 0], sizes = [1, 8, 8], strides = [1, 1, 1]} : vector<8x8x8xbf16> to vector<1x8x8xbf16>
    %109 = vector.shape_cast %108 : vector<1x8x8xbf16> to vector<8x8xbf16>
    %110 = vector.extract_strided_slice %103 {offsets = [3, 0, 0], sizes = [1, 8, 8], strides = [1, 1, 1]} : vector<8x8x8xbf16> to vector<1x8x8xbf16>
    %111 = vector.shape_cast %110 : vector<1x8x8xbf16> to vector<8x8xbf16>
    %112 = tpu.concatenate %105, %107, %109, %111 in 1 : vector<8x8xbf16>, vector<8x8xbf16>, vector<8x8xbf16>, vector<8x8xbf16> -> vector<8x32xbf16>
    %113 = vector.extract_strided_slice %103 {offsets = [4, 0, 0], sizes = [1, 8, 8], strides = [1, 1, 1]} : vector<8x8x8xbf16> to vector<1x8x8xbf16>
    %114 = vector.shape_cast %113 : vector<1x8x8xbf16> to vector<8x8xbf16>
    %115 = vector.extract_strided_slice %103 {offsets = [5, 0, 0], sizes = [1, 8, 8], strides = [1, 1, 1]} : vector<8x8x8xbf16> to vector<1x8x8xbf16>
    %116 = vector.shape_cast %115 : vector<1x8x8xbf16> to vector<8x8xbf16>
    %117 = vector.extract_strided_slice %103 {offsets = [6, 0, 0], sizes = [1, 8, 8], strides = [1, 1, 1]} : vector<8x8x8xbf16> to vector<1x8x8xbf16>
    %118 = vector.shape_cast %117 : vector<1x8x8xbf16> to vector<8x8xbf16>
    %119 = vector.extract_strided_slice %103 {offsets = [7, 0, 0], sizes = [1, 8, 8], strides = [1, 1, 1]} : vector<8x8x8xbf16> to vector<1x8x8xbf16>
    %120 = vector.shape_cast %119 : vector<1x8x8xbf16> to vector<8x8xbf16>
    %121 = tpu.concatenate %114, %116, %118, %120 in 1 : vector<8x8xbf16>, vector<8x8xbf16>, vector<8x8xbf16>, vector<8x8xbf16> -> vector<8x32xbf16>
    %122 = tpu.concatenate %112, %121 in 0 : vector<8x32xbf16>, vector<8x32xbf16> -> vector<16x32xbf16>
    %c0_21 = arith.constant 0 : index
    %c0_22 = arith.constant 0 : index
    %c0_23 = arith.constant 0 : index
    %123 = vector.load %arg6[%c0_21, %c0_22, %c0_23] : memref<1x32x32xbf16, #tpu.memory_space<vmem>>, vector<1x32x32xbf16>
    %124 = vector.shape_cast %123 : vector<1x32x32xbf16> to vector<32x32xbf16>
    %cst_24 = arith.constant dense<0.000000e+00> : vector<16x32xf32>
    %125 = tpu.matmul %122, %124, %cst_24 {dimension_numbers = #tpu.dot_dimension_numbers<[1], [0], [0], [1], [0, 0, 1, 1], [], []>} : vector<16x32xbf16>, vector<32x32xbf16>, vector<16x32xf32> -> vector<16x32xf32>
    %c0_25 = arith.constant 0 : index
    %c0_26 = arith.constant 0 : index
    %c0_27 = arith.constant 0 : index
    %126 = vector.load %arg7[%c0_25, %c0_26, %c0_27] : memref<1x1x32xf32, #tpu.memory_space<vmem>>, vector<1x1x32xf32>
    %127 = vector.shape_cast %126 : vector<1x1x32xf32> to vector<1x32xf32>
    %128 = vector.broadcast %127 : vector<1x32xf32> to vector<16x32xf32>
    %129 = arith.addf %125, %128 : vector<16x32xf32>
    %130 = arith.addf %3, %129 : vector<16x32xf32>
    %c0_28 = arith.constant 0 : index
    %c0_29 = arith.constant 0 : index
    %c0_30 = arith.constant 0 : index
    %131 = vector.load %arg8[%c0_28, %c0_29, %c0_30] : memref<1x1x32xf32, #tpu.memory_space<vmem>>, vector<1x1x32xf32>
    %132 = vector.shape_cast %131 : vector<1x1x32xf32> to vector<1x32xf32>
    %c0_31 = arith.constant 0 : index
    %c0_32 = arith.constant 0 : index
    %c0_33 = arith.constant 0 : index
    %133 = vector.load %arg9[%c0_31, %c0_32, %c0_33] : memref<1x1x32xf32, #tpu.memory_space<vmem>>, vector<1x1x32xf32>
    %134 = vector.shape_cast %133 : vector<1x1x32xf32> to vector<1x32xf32>
    %cst_34 = arith.constant dense<0.000000e+00> : vector<16xf32>
    %135 = vector.multi_reduction <add>, %130, %cst_34 [1] : vector<16x32xf32> to vector<16xf32>
    %136 = vector.shape_cast %135 : vector<16xf32> to vector<16x1xf32>
    %137 = arith.mulf %130, %130 : vector<16x32xf32>
    %cst_35 = arith.constant dense<0.000000e+00> : vector<16xf32>
    %138 = vector.multi_reduction <add>, %137, %cst_35 [1] : vector<16x32xf32> to vector<16xf32>
    %139 = vector.shape_cast %138 : vector<16xf32> to vector<16x1xf32>
    %cst_36 = arith.constant 3.125000e-02 : f32
    %140 = vector.broadcast %cst_36 : f32 to vector<16x1xf32>
    %141 = arith.mulf %136, %140 : vector<16x1xf32>
    %cst_37 = arith.constant 3.125000e-02 : f32
    %142 = vector.broadcast %cst_37 : f32 to vector<16x1xf32>
    %143 = arith.mulf %139, %142 : vector<16x1xf32>
    %144 = arith.mulf %141, %141 : vector<16x1xf32>
    %145 = arith.subf %143, %144 : vector<16x1xf32>
    %cst_38 = arith.constant 0.000000e+00 : f32
    %146 = vector.broadcast %cst_38 : f32 to vector<16x1xf32>
    %147 = arith.maximumf %145, %146 : vector<16x1xf32>
    %148 = vector.broadcast %141 : vector<16x1xf32> to vector<16x32xf32>
    %149 = arith.subf %130, %148 : vector<16x32xf32>
    %cst_39 = arith.constant 9.99999974E-6 : f32
    %150 = vector.broadcast %cst_39 : f32 to vector<16x1xf32>
    %151 = arith.addf %147, %150 : vector<16x1xf32>
    %152 = math.rsqrt %151 : vector<16x1xf32>
    %153 = vector.broadcast %152 : vector<16x1xf32> to vector<16x32xf32>
    %154 = arith.mulf %149, %153 : vector<16x32xf32>
    %155 = vector.broadcast %132 : vector<1x32xf32> to vector<16x32xf32>
    %156 = arith.mulf %154, %155 : vector<16x32xf32>
    %157 = vector.broadcast %134 : vector<1x32xf32> to vector<16x32xf32>
    %158 = arith.addf %156, %157 : vector<16x32xf32>
    %159 = arith.truncf %158 : vector<16x32xf32> to vector<16x32xbf16>
    %c0_40 = arith.constant 0 : index
    %c0_41 = arith.constant 0 : index
    %c0_42 = arith.constant 0 : index
    %160 = vector.load %arg10[%c0_40, %c0_41, %c0_42] : memref<1x32x128xbf16, #tpu.memory_space<vmem>>, vector<1x32x128xbf16>
    %161 = vector.shape_cast %160 : vector<1x32x128xbf16> to vector<32x128xbf16>
    %cst_43 = arith.constant dense<0.000000e+00> : vector<16x128xf32>
    %162 = tpu.matmul %159, %161, %cst_43 {dimension_numbers = #tpu.dot_dimension_numbers<[1], [0], [0], [1], [0, 0, 1, 1], [], []>} : vector<16x32xbf16>, vector<32x128xbf16>, vector<16x128xf32> -> vector<16x128xf32>
    %cst_44 = arith.constant 5.000000e-01 : f32
    %163 = vector.broadcast %cst_44 : f32 to vector<16x128xf32>
    %164 = arith.mulf %163, %162 : vector<16x128xf32>
    %cst_45 = arith.constant 4.471500e-02 : f32
    %165 = vector.broadcast %cst_45 : f32 to vector<16x128xf32>
    %166 = arith.mulf %165, %162 : vector<16x128xf32>
    %167 = arith.mulf %166, %162 : vector<16x128xf32>
    %168 = arith.mulf %167, %162 : vector<16x128xf32>
    %169 = arith.addf %162, %168 : vector<16x128xf32>
    %cst_46 = arith.constant 0.797884583 : f32
    %170 = vector.broadcast %cst_46 : f32 to vector<16x128xf32>
    %171 = arith.mulf %170, %169 : vector<16x128xf32>
    %172 = math.tanh %171 : vector<16x128xf32>
    %cst_47 = arith.constant 1.000000e+00 : f32
    %173 = vector.broadcast %cst_47 : f32 to vector<16x128xf32>
    %174 = arith.addf %173, %172 : vector<16x128xf32>
    %175 = arith.mulf %164, %174 : vector<16x128xf32>
    %176 = arith.truncf %175 : vector<16x128xf32> to vector<16x128xbf16>
    %c0_48 = arith.constant 0 : index
    %c0_49 = arith.constant 0 : index
    %c0_50 = arith.constant 0 : index
    %177 = vector.load %arg11[%c0_48, %c0_49, %c0_50] : memref<1x128x32xbf16, #tpu.memory_space<vmem>>, vector<1x128x32xbf16>
    %178 = vector.shape_cast %177 : vector<1x128x32xbf16> to vector<128x32xbf16>
    %cst_51 = arith.constant dense<0.000000e+00> : vector<16x32xf32>
    %179 = tpu.matmul %176, %178, %cst_51 {dimension_numbers = #tpu.dot_dimension_numbers<[1], [0], [0], [1], [0, 0, 1, 1], [], []>} : vector<16x128xbf16>, vector<128x32xbf16>, vector<16x32xf32> -> vector<16x32xf32>
    %180 = arith.addf %130, %179 : vector<16x32xf32>
    %c0_52 = arith.constant 0 : index
    %c0_53 = arith.constant 0 : index
    %181 = vector.load %arg15[%c0_52, %c0_53] : memref<16x32xf32, #tpu.memory_space<vmem>>, vector<16x32xf32>
    tpu.vector_store %arg15[%c0_52, %c0_53], %180 {strides = array<i32>} : memref<16x32xf32, #tpu.memory_space<vmem>>, vector<16x32xf32>,
    %c1_i32 = arith.constant 1 : i32
    %182 = arith.cmpi eq, %arg1, %c1_i32 : i32
    %183 = arith.extui %182 : i1 to i32
    %c0_i32_54 = arith.constant 0 : i32
    %184 = arith.cmpi ne, %183, %c0_i32_54 : i32
    scf.if %184 {
      %c0_55 = arith.constant 0 : index
      %c0_56 = arith.constant 0 : index
      %c0_57 = arith.constant 0 : index
      %185 = vector.load %arg12[%c0_55, %c0_56, %c0_57] : memref<1x1x32xf32, #tpu.memory_space<vmem>>, vector<1x1x32xf32>
      %186 = vector.shape_cast %185 : vector<1x1x32xf32> to vector<1x32xf32>
      %c0_58 = arith.constant 0 : index
      %c0_59 = arith.constant 0 : index
      %c0_60 = arith.constant 0 : index
      %187 = vector.load %arg13[%c0_58, %c0_59, %c0_60] : memref<1x1x32xf32, #tpu.memory_space<vmem>>, vector<1x1x32xf32>
      %188 = vector.shape_cast %187 : vector<1x1x32xf32> to vector<1x32xf32>
      %cst_61 = arith.constant dense<0.000000e+00> : vector<16xf32>
      %189 = vector.multi_reduction <add>, %180, %cst_61 [1] : vector<16x32xf32> to vector<16xf32>
      %190 = vector.shape_cast %189 : vector<16xf32> to vector<16x1xf32>
      %191 = arith.mulf %180, %180 : vector<16x32xf32>
      %cst_62 = arith.constant dense<0.000000e+00> : vector<16xf32>
      %192 = vector.multi_reduction <add>, %191, %cst_62 [1] : vector<16x32xf32> to vector<16xf32>
      %193 = vector.shape_cast %192 : vector<16xf32> to vector<16x1xf32>
      %cst_63 = arith.constant 3.125000e-02 : f32
      %194 = vector.broadcast %cst_63 : f32 to vector<16x1xf32>
      %195 = arith.mulf %190, %194 : vector<16x1xf32>
      %cst_64 = arith.constant 3.125000e-02 : f32
      %196 = vector.broadcast %cst_64 : f32 to vector<16x1xf32>
      %197 = arith.mulf %193, %196 : vector<16x1xf32>
      %198 = arith.mulf %195, %195 : vector<16x1xf32>
      %199 = arith.subf %197, %198 : vector<16x1xf32>
      %cst_65 = arith.constant 0.000000e+00 : f32
      %200 = vector.broadcast %cst_65 : f32 to vector<16x1xf32>
      %201 = arith.maximumf %199, %200 : vector<16x1xf32>
      %202 = vector.broadcast %195 : vector<16x1xf32> to vector<16x32xf32>
      %203 = arith.subf %180, %202 : vector<16x32xf32>
      %cst_66 = arith.constant 9.99999974E-6 : f32
      %204 = vector.broadcast %cst_66 : f32 to vector<16x1xf32>
      %205 = arith.addf %201, %204 : vector<16x1xf32>
      %206 = math.rsqrt %205 : vector<16x1xf32>
      %207 = vector.broadcast %206 : vector<16x1xf32> to vector<16x32xf32>
      %208 = arith.mulf %203, %207 : vector<16x32xf32>
      %209 = vector.broadcast %186 : vector<1x32xf32> to vector<16x32xf32>
      %210 = arith.mulf %208, %209 : vector<16x32xf32>
      %211 = vector.broadcast %188 : vector<1x32xf32> to vector<16x32xf32>
      %212 = arith.addf %210, %211 : vector<16x32xf32>
      %c0_67 = arith.constant 0 : index
      %c0_68 = arith.constant 0 : index
      %213 = vector.load %arg14[%c0_67, %c0_68] : memref<16x32xf32, #tpu.memory_space<vmem>>, vector<16x32xf32>
      tpu.vector_store %arg14[%c0_67, %c0_68], %212 {strides = array<i32>} : memref<16x32xf32, #tpu.memory_space<vmem>>, vector<16x32xf32>,
    } else {
    }
    return
  }
  func.func @transform_0(%arg0: i32, %arg1: i32) -> (i32, i32) {
    %c0_i32 = arith.constant 0 : i32
    %c0_i32_0 = arith.constant 0 : i32
    return %arg0, %c0_i32 : i32, i32
  }
  func.func @transform_1(%arg0: i32, %arg1: i32) -> (i32, i32, i32) {
    %c0_i32 = arith.constant 0 : i32
    %c0_i32_0 = arith.constant 0 : i32
    %c0_i32_1 = arith.constant 0 : i32
    return %arg1, %c0_i32, %c0_i32_0 : i32, i32, i32
  }
  func.func @transform_2(%arg0: i32, %arg1: i32) -> (i32, i32, i32) {
    %c0_i32 = arith.constant 0 : i32
    %c0_i32_0 = arith.constant 0 : i32
    %c0_i32_1 = arith.constant 0 : i32
    return %arg1, %c0_i32, %c0_i32_0 : i32, i32, i32
  }
  func.func @transform_3(%arg0: i32, %arg1: i32) -> (i32, i32, i32) {
    %c0_i32 = arith.constant 0 : i32
    %c0_i32_0 = arith.constant 0 : i32
    %c0_i32_1 = arith.constant 0 : i32
    return %arg1, %c0_i32, %c0_i32_0 : i32, i32, i32
  }
  func.func @transform_4(%arg0: i32, %arg1: i32) -> (i32, i32, i32) {
    %c0_i32 = arith.constant 0 : i32
    %c0_i32_0 = arith.constant 0 : i32
    %c0_i32_1 = arith.constant 0 : i32
    return %arg1, %c0_i32, %c0_i32_0 : i32, i32, i32
  }
  func.func @transform_5(%arg0: i32, %arg1: i32) -> (i32, i32, i32) {
    %c0_i32 = arith.constant 0 : i32
    %c0_i32_0 = arith.constant 0 : i32
    %c0_i32_1 = arith.constant 0 : i32
    return %arg1, %c0_i32, %c0_i32_0 : i32, i32, i32
  }
  func.func @transform_6(%arg0: i32, %arg1: i32) -> (i32, i32, i32) {
    %c0_i32 = arith.constant 0 : i32
    %c0_i32_0 = arith.constant 0 : i32
    %c0_i32_1 = arith.constant 0 : i32
    return %arg1, %c0_i32, %c0_i32_0 : i32, i32, i32
  }
  func.func @transform_7(%arg0: i32, %arg1: i32) -> (i32, i32, i32) {
    %c0_i32 = arith.constant 0 : i32
    %c0_i32_0 = arith.constant 0 : i32
    %c0_i32_1 = arith.constant 0 : i32
    return %arg1, %c0_i32, %c0_i32_0 : i32, i32, i32
  }
  func.func @transform_8(%arg0: i32, %arg1: i32) -> (i32, i32, i32) {
    %c0_i32 = arith.constant 0 : i32
    %c0_i32_0 = arith.constant 0 : i32
    %c0_i32_1 = arith.constant 0 : i32
    return %arg1, %c0_i32, %c0_i32_0 : i32, i32, i32
  }
  func.func @transform_9(%arg0: i32, %arg1: i32) -> (i32, i32, i32) {
    %c0_i32 = arith.constant 0 : i32
    %c0_i32_0 = arith.constant 0 : i32
    %c0_i32_1 = arith.constant 0 : i32
    return %arg1, %c0_i32, %c0_i32_0 : i32, i32, i32
  }
  func.func @transform_10(%arg0: i32, %arg1: i32) -> (i32, i32, i32) {
    %c0_i32 = arith.constant 0 : i32
    %c0_i32_0 = arith.constant 0 : i32
    %c0_i32_1 = arith.constant 0 : i32
    %c0_i32_2 = arith.constant 0 : i32
    return %c0_i32, %c0_i32_0, %c0_i32_1 : i32, i32, i32
  }
  func.func @transform_11(%arg0: i32, %arg1: i32) -> (i32, i32, i32) {
    %c0_i32 = arith.constant 0 : i32
    %c0_i32_0 = arith.constant 0 : i32
    %c0_i32_1 = arith.constant 0 : i32
    %c0_i32_2 = arith.constant 0 : i32
    return %c0_i32, %c0_i32_0, %c0_i32_1 : i32, i32, i32
  }
  func.func @transform_12(%arg0: i32, %arg1: i32) -> (i32, i32) {
    %c0_i32 = arith.constant 0 : i32
    %c0_i32_0 = arith.constant 0 : i32
    return %arg0, %c0_i32 : i32, i32
  }
}

</mosaic_0001>

<bundles_post_ra>
// kernel: tpu_custom_call.1
= control target key start
LH: loop header
LB: loop body
LE: loop exit
PB: predicated region body
PF: predicated region fallthrough
CT: control target
= control target key end

     0   :  { %s3069_s0 = inlined_call_operand.vmem [shape: f32[16,32], index: 0, kind: input, shape index: {}]   ;;  %s3070_s1 = inlined_call_operand.vmem [shape: f32[2,1,32], index: 1, kind: input, shape index: {}]   ;;  %s3071_s2 = inlined_call_operand.vmem [shape: f32[2,1,32], index: 2, kind: input, shape index: {}]   ;;  %s3072_s3 = inlined_call_operand.vmem [shape: bf16[2,32,96], index: 3, kind: input, shape index: {}]   ;;  %s3073_s4 = inlined_call_operand.vmem [shape: bf16[2,32,32], index: 4, kind: input, shape index: {}]   ;;  %s3074_s5 = inlined_call_operand.vmem [shape: f32[2,1,32], index: 5, kind: input, shape index: {}]   ;;  %s3075_s6 = inlined_call_operand.vmem [shape: f32[2,1,32], index: 6, kind: input, shape index: {}]   ;;  %s3076_s7 = inlined_call_operand.vmem [shape: f32[2,1,32], index: 7, kind: input, shape index: {}]   ;;  %s3077_s8 = inlined_call_operand.vmem [shape: bf16[2,32,128], index: 8, kind: input, shape index: {}]   ;;  %s3078_s9 = inlined_call_operand.vmem [shape: bf16[2,128,32], index: 9, kind: input, shape index: {}]   ;;  %s3079_s10 = inlined_call_operand.vmem [shape: f32[1,1,32], index: 10, kind: input, shape index: {}]   ;;  %s3080_s11 = inlined_call_operand.vmem [shape: f32[1,1,32], index: 11, kind: input, shape index: {}]   ;;  %s3081_s12 = inlined_call_operand.hbm [shape: f32[16,32], index: 12, kind: output, shape index: {}]  }
   0x1   :  { %3084 = sst [smem:[#allocation8_spill]] %s3072_s3 }
   0x2   :  { %3085 = sst [smem:[#allocation9_spill]] %s3081_s12 }
   0x3   :  { %17 = vsyncpa [#allocation4], 0  ;;  %s2630_s21 = smov 0   ;;  %s2632_s22 = smov 0  }
   0x4   :  { %s2634_s23 = smov 0  }
   0x5 LB: > { %3086 = sst [smem:[#allocation6_spill]] %s2547_s22  ;;  %s32_s25 = sadd.s32 1, %s2547_s22  ;;  %s2551_s23 = sphi %s2634_s23, %s23_s23   ;;  %s2547_s22 = sphi %s2632_s22, %s3096_s22   ;;  %s2543_s21 = sphi %s2630_s21, %s3095_s21  }
   0x6   : > { %p33_p0 = scmp.ge.s32.totalorder %s32_s25, 2  ;;  %p2146_p1 = scmp.ge.s32.totalorder %s2551_s23, 1 }
   0x7   : > { %p456_p2 = scmp.lt.s32.totalorder %s2551_s23, 3 }
   0x8   : > { %s3098_s25 = smov (%p33_p0, %s32_s25), 0 }
   0x9   : > { %3087 = sst [smem:[#allocation7_spill]] %s3098_s25  ;;  %p457_p3 = pnand %p2146_p1, %p456_p2 }
   0xa   : > { %p534_p4 = scmp.lt.s32.totalorder (!%p457_p3), %s2543_s21, 1  ;;  %s3088_s3 = sld [smem:[#allocation8_spill]] (!%p457_p3) }
   0xb   : > { %460 = sbr.rel (%p457_p3) target bundleno = 2650 (0xa5a), region = 68  ;;  %p2155_p5 = scmp.ne.s32.totalorder (!%p457_p3), %s2543_s21, 0 }
  0x12   : > { %s2653_s26 = scalar_select %p534_p4, %s2543_s21, 1 }
  0x13   : > { %574 = sbr.rel (%p2155_p5) target bundleno = 26 (0x1a), region = 72  ;;  %v575_v0 = vld [vmem:[%s3069_s0] sm:$0xff] (!%p2155_p5)  ;;  %vm577_vm0 = vcmask (!%p2155_p5), 261120   ;;  %v576_v1 = vld [vmem:[%s3069_s0 + $0x8] sm:$0xff] (!%p2155_p5) }
  0x14   : > { %s2201_s15 = sshll.u32 %s2653_s26, 4  ;;  %s555_s30 = scalar_lea.vmem %s3075_s6, %s2653_s26  ;;  %578 = vst.msk [vmem:[#allocation2] sm:$0xff] (!%p2155_p5), %vm577_vm0, %v575_v0  ;;  %579 = vst.msk [vmem:[#allocation2 + $0x8] sm:$0xff] (!%p2155_p5), %vm577_vm0, %v576_v1 }
  0x15   : > { %s2671_s27 = scalar_lea.vmem %s3088_s3, %s2201_s15  ;;  %s2676_s25 = scalar_lea.vmem %s3073_s4, %s2201_s15 }
  0x16   : > { %s558_s12 = scalar_lea.vmem %s3076_s7, %s2653_s26  ;;  %s2689_s18 = scalar_lea.vmem %s3077_s8, %s2201_s15 }
  0x17   : > { %s2204_s19 = sshll.u32 %s2653_s26, 6 }
  0x18   : > { %s2695_s24 = scalar_lea.vmem %s3078_s9, %s2204_s19 }
  0x1a PF: > { %vm584_vm1 = vcmask 261120   ;;  %v2437_v10 = vld [vmem:[%s2671_s27] sm:$0xff]   ;;  %v2553_v11 = vmov 0.0   ;;  %vm2554_vm2 = vmmov 0   ;;  %v2438_v12 = vld [vmem:[%s2671_s27 + $0x8] sm:$0xff]   ;;  %s3089_s27 = scalar_lea.vmem %s3070_s1, %s2653_s26  ;;  %s3090_s17 = scalar_lea.vmem %s3071_s2, %s2653_s26  ;;  %vm711_vm3 = vcmask 64512  }
  0x1b   : > { %v2704_v2 = vld [vmem:[#allocation2] sm:$0xff]  ;;  %v2706_v3 = vld [vmem:[#allocation2 + $0x8] sm:$0xff]  ;;  %2255 = vmatprep.subr.bf16.mxu0 %v2553_v11  ;;  %2259 = vmatprep.mubr.msk.bf16.mxu0 %vm2554_vm2, %v2553_v11  ;;  %s2555_s19 = smov 112   ;;  %s2556_s20 = smov 120   ;;  %vm1195_vm4 = vcmask 1043456   ;;  %vm1595_vm5 = vcmask 130048  }
  0x1c   : > { %v585_v4 = vsel %vm584_vm1, %v2704_v2, 0.0  ;;  %v591_v5 = vmul.f32 %v2704_v2, %v2704_v2  ;;  %v588_v6 = vsel %vm584_vm1, %v2706_v3, 0.0  ;;  %v592_v7 = vmul.f32 %v2706_v3, %v2706_v3  ;;  %2256 = vmatpush3.bf16.msra.mxu0 %v2437_v10  ;;  %2275 = vmatprep.subr.bf16.mxu1 %v2553_v11  ;;  %v2156_v32 = vld [vmem:[%s3089_s27] ss:$0 sm:$0xff]  ;;  %s2557_s22 = smov 104   ;;  %s2558_s29 = smov 96  }
  0x1d   : > { %586 = vadd.xlane.f32.xlu0 %v585_v4  ;;  %2257 = vmatprep.subr.bf16.mxu0 %v2553_v11  ;;  %v2157_v37 = vld [vmem:[%s3090_s17] ss:$0 sm:$0xff]  ;;  %s2559_s14 = smov 64   ;;  %s2560_s28 = smov 8   ;;  %vm1598_vm6 = vcmask 195584  }
  0x1e   : > { %v593_v8 = vsel %vm584_vm1, %v591_v5, 0.0  ;;  %v596_v9 = vsel %vm584_vm1, %v592_v7, 0.0  ;;  %2277 = vmatprep.mubr.msk.bf16.mxu1 %vm2554_vm2, %v2553_v11  ;;  %s2561_s3 = smov 16   ;;  %s2562_s15 = smov 24  }
  0x1f   : > { %594 = vadd.xlane.f32.xlu1 %v593_v8  ;;  %s3091_s13 = scalar_lea.vmem %s3074_s5, %s2653_s26  ;;  %p2194_p6 = scmp.ne.s32.totalorder %s2543_s21, 1 }
  0x20   : > { %2258 = vmatpush3.bf16.msra.mxu0 %v2438_v12 }
  0x21   : > { %589 = vadd.xlane.f32.xlu0 %v588_v6  ;;  %2263 = vmatprep.subr.bf16.mxu0 %v2553_v11 }
  0x23   : > { %597 = vadd.xlane.f32.xlu1 %v596_v9 }
  0xaa   : > { %v587_v13 = vpop.xlane.xlu0 %586 }
  0xab   : > { %v599_v14 = vmul.f32 0.03125, %v587_v13 }
  0xac   : > { %v595_v15 = vpop.xlane.xlu1 %594 }
  0xad   : > { %v603_v16 = vmul.f32 %v599_v14, %v599_v14  ;;  %v601_v17 = vmul.f32 0.03125, %v595_v15  ;;  %v609_v29 = vsub.f32 %v2704_v2, %v599_v14 }
  0xae   : > { %v590_v18 = vpop.xlane.xlu0 %589 }
  0xaf   : > { %v605_v19 = vsub.f32 %v601_v17, %v603_v16  ;;  %v600_v20 = vmul.f32 0.03125, %v590_v18 }
  0xb0   : > { %v598_v21 = vpop.xlane.xlu1 %597 }
  0xb1   : > { %v607_v22 = vmax.f32 %v605_v19, 0.0  ;;  %v604_v23 = vmul.f32 %v600_v20, %v600_v20  ;;  %v602_v24 = vmul.f32 0.03125, %v598_v21  ;;  %v610_v33 = vsub.f32 %v2706_v3, %v600_v20 }
  0xb3   : > { %v611_v25 = vadd.f32 1e-05, %v607_v22  ;;  %v606_v26 = vsub.f32 %v602_v24, %v604_v23 }
  0xb5   : > { %2451 = vrsqrt.f32 %v611_v25  ;;  %v608_v27 = vmax.f32 %v606_v26, 0.0 }
  0xb7   : > { %v612_v28 = vadd.f32 1e-05, %v608_v27 }
  0xb9   : > { %2453 = vrsqrt.f32 %v612_v28 }
  0xbf   : > { %v2452_v30 = vpop.eup %2451 }
  0xc0   : > { %v615_v31 = vmul.f32 %v2452_v30, %v609_v29 }
  0xc2   : > { %v623_v36 = vmul.f32 %v2156_v32, %v615_v31 }
  0xc3   : > { %v2454_v34 = vpop.eup %2453 }
  0xc4   : > { %v616_v35 = vmul.f32 %v2454_v34, %v610_v33  ;;  %v631_v39 = vadd.f32 %v2157_v37, %v623_v36 }
  0xc6   : > { %v624_v38 = vmul.f32 %v2156_v32, %v616_v35 }
  0xc8   : > { %v632_v40 = vadd.f32 %v2157_v37, %v624_v38 }
  0xca   : > { %v633_v41 = vpack.c.bf16 %v632_v40, %v631_v39 }
  0xcc   : > { %2260 = vmatmul.mubr.msk.bf16.vlgmr.msra.gmra.mrb[0].mxu0 %vm584_vm1, %v633_v41 }
  0xcd   : > { %2265 = vmatprep.mubr.msk.bf16.mxu0 %vm2554_vm2, %v2553_v11 }
 0x19f   : > { %v687_v42 = vpop.f32.mrb[0].mxu0 }
 0x1a0   : > { %v2261_v43 = vpop.f32.mrb[1].mxu0 }
 0x1a1   : > { %v690_v44 = vpop.f32.mrb[2].mxu0 }
 0x1a2   : > { %v2743_v45 = vpack.c.bf16 %v690_v44, %v687_v42  ;;  %v2262_v46 = vpop.f32.mrb[3].mxu0 }
 0x1a4   : > { %698 = vrot.lane.b32.xlu1 %v2743_v45, %s2555_s19  ;;  %696 = vrot.lane.b32.xlu0 %v2743_v45, %s2556_s20  ;;  %v2748_v47 = vrot.slane %v2743_v45, 4 }
 0x1a8   : > { %700 = vrot.lane.b32.xlu1 %v2743_v45, %s2557_s22  ;;  %705 = vrot.lane.b32.xlu0 %v2748_v47, %s2555_s19 }
 0x1ac   : > { %709 = vrot.lane.b32.xlu0 %v2743_v45, %s2558_s29  ;;  %703 = vrot.lane.b32.xlu1 %v2748_v47, %s2556_s20 }
 0x1b0   : > { %707 = vrot.lane.b32.xlu1 %v2748_v47, %s2557_s22 }
 0x216   : > { %v2755_v48 = vpop.permute.xlu1 %698  ;;  %v2757_v49 = vpop.permute.xlu0 %696 }
 0x217   : > { %806 = vrot.lane.b32.xlu0 %v2755_v48, %s2558_s29  ;;  %758 = vrot.lane.b32.xlu1 %v2757_v49, %s2558_s29 }
 0x21a   : > { %v2761_v50 = vpop.permute.xlu1 %700  ;;  %v2763_v51 = vpop.permute.xlu0 %705 }
 0x21b   : > { %902 = vrot.lane.b32.xlu0 %v2748_v47, %s2558_s29  ;;  %854 = vrot.lane.b32.xlu1 %v2761_v50, %s2558_s29 }
 0x21e   : > { %v710_v52 = vpop.permute.xlu0 %709  ;;  %v2767_v53 = vpop.permute.xlu1 %703 }
 0x21f   : > { %v716_v54 = vsel %vm711_vm3, %v710_v52, 0  ;;  %998 = vrot.lane.b32.xlu0 %v2763_v51, %s2558_s29  ;;  %950 = vrot.lane.b32.xlu1 %v2767_v53, %s2558_s29 }
 0x220   : > { %2264 = vmatpush3.bf16.xpose.msra.mxu0 %v716_v54 }
 0x221   : > { %2269 = vmatprep.subr.bf16.mxu0 %v2553_v11 }
 0x222   : > { %v2773_v55 = vpop.permute.xlu1 %707 }
 0x223   : > { %1046 = vrot.lane.b32.xlu1 %v2773_v55, %s2558_s29 }
 0x227   : > { %2266 = vmatmul.mubr.msk.bf16.vlgmr.msra.gmra.mrb[4].mxu0 %vm711_vm3, %v2743_v45 }
 0x228   : > { %2271 = vmatprep.mubr.msk.bf16.mxu0 %vm2554_vm2, %v2553_v11 }
 0x289   : > { %v807_v56 = vpop.permute.xlu0 %806  ;;  %v759_v57 = vpop.permute.xlu1 %758 }
 0x28a   : > { %v764_v58 = vsel %vm711_vm3, %v759_v57, 0  ;;  %v812_v59 = vsel %vm711_vm3, %v807_v56, 0 }
 0x28b   : > { %2270 = vmatpush3.bf16.xpose.msra.mxu0 %v764_v58  ;;  %2276 = vmatpush3.bf16.xpose.msra.mxu1 %v812_v59 }
 0x28c   : > { %2281 = vmatprep.subr.bf16.mxu0 %v2553_v11  ;;  %2287 = vmatprep.subr.bf16.mxu1 %v2553_v11 }
 0x28d   : > { %v903_v60 = vpop.permute.xlu0 %902  ;;  %v855_v61 = vpop.permute.xlu1 %854 }
 0x28e   : > { %v908_v62 = vsel %vm711_vm3, %v903_v60, 0  ;;  %v860_v63 = vsel %vm711_vm3, %v855_v61, 0 }
 0x291   : > { %v999_v0 = vpop.permute.xlu0 %998  ;;  %v951_v1 = vpop.permute.xlu1 %950 }
 0x292   : > { %2272 = vmatmul.mubr.msk.bf16.vlgmr.msra.gmra.mrb[8].mxu0 %vm711_vm3, %v2757_v49  ;;  %2278 = vmatmul.mubr.msk.bf16.vlgmr.msra.gmra.mrb[0].mxu1 %vm711_vm3, %v2755_v48  ;;  %v1004_v4 = vsel %vm711_vm3, %v999_v0, 0  ;;  %v956_v5 = vsel %vm711_vm3, %v951_v1, 0 }
 0x293   : > { %2282 = vmatpush3.bf16.xpose.msra.mxu0 %v860_v63  ;;  %2288 = vmatpush3.bf16.xpose.msra.mxu1 %v908_v62 }
 0x294   : > { %2283 = vmatprep.mubr.msk.bf16.mxu0 %vm2554_vm2, %v2553_v11  ;;  %2289 = vmatprep.mubr.msk.bf16.mxu1 %vm2554_vm2, %v2553_v11 }
 0x295   : > { %2293 = vmatprep.subr.bf16.mxu0 %v2553_v11  ;;  %2299 = vmatprep.subr.bf16.mxu1 %v2553_v11  ;;  %v1047_v6 = vpop.permute.xlu1 %1046 }
 0x296   : > { %v1052_v7 = vsel %vm711_vm3, %v1047_v6, 0 }
 0x29a   : > { %2284 = vmatmul.mubr.msk.bf16.vlgmr.msra.gmra.mrb[12].mxu0 %vm711_vm3, %v2761_v50  ;;  %2290 = vmatmul.mubr.msk.bf16.vlgmr.msra.gmra.mrb[4].mxu1 %vm711_vm3, %v2748_v47 }
 0x29b   : > { %2294 = vmatpush3.bf16.xpose.msra.mxu0 %v956_v5  ;;  %2300 = vmatpush3.bf16.xpose.msra.mxu1 %v1004_v4 }
 0x29c   : > { %2295 = vmatprep.mubr.msk.bf16.mxu0 %vm2554_vm2, %v2553_v11  ;;  %2301 = vmatprep.mubr.msk.bf16.mxu1 %vm2554_vm2, %v2553_v11 }
 0x29d   : > { %2305 = vmatprep.subr.bf16.mxu0 %v2553_v11  ;;  %2311 = vmatprep.subr.bf16.mxu1 %v2553_v11 }
 0x2a2   : > { %2296 = vmatmul.mubr.msk.bf16.vlgmr.msra.gmra.mrb[16].mxu0 %vm711_vm3, %v2767_v53  ;;  %2302 = vmatmul.mubr.msk.bf16.vlgmr.msra.gmra.mrb[8].mxu1 %vm711_vm3, %v2763_v51 }
 0x2a3   : > { %2306 = vmatpush3.bf16.xpose.msra.mxu0 %v1052_v7  ;;  %2307 = vmatprep.mubr.msk.bf16.mxu0 %vm2554_vm2, %v2553_v11 }
 0x2a4   : > { %2317 = vmatprep.subr.bf16.mxu0 %v2553_v11  ;;  %2313 = vmatprep.mubr.msk.bf16.mxu1 %vm2554_vm2, %v2553_v11 }
 0x2aa   : > { %2308 = vmatmul.mubr.msk.bf16.vlgmr.msra.gmra.mrb[20].mxu0 %vm711_vm3, %v2773_v55 }
 0x2ab   : > { %2319 = vmatprep.mubr.msk.bf16.mxu0 %vm2554_vm2, %v2553_v11 }
 0x2fa   : > { %v752_v8 = vpop.f32.mrb[4].mxu0 }
 0x2fb   : > { %v2267_v9 = vpop.f32.mrb[5].mxu0  ;;  %v1094_v10 = vsel %vm711_vm3, %v752_v8, -inf }
 0x2fc   : > { %1095 = vmax.xlane.f32.xlu0 %v1094_v10  ;;  %v755_v12 = vpop.f32.mrb[6].mxu0 }
 0x2fd   : > { %v2268_v13 = vpop.f32.mrb[7].mxu0 }
 0x365   : > { %v800_v14 = vpop.f32.mrb[8].mxu0  ;;  %v848_v15 = vpop.f32.mrb[0].mxu1 }
 0x366   : > { %v2273_v16 = vpop.f32.mrb[9].mxu0  ;;  %v2279_v17 = vpop.f32.mrb[1].mxu1  ;;  %v1100_v18 = vsel %vm711_vm3, %v848_v15, -inf  ;;  %v1097_v19 = vsel %vm711_vm3, %v800_v14, -inf }
 0x367   : > { %v851_v20 = vpop.f32.mrb[2].mxu1  ;;  %1101 = vmax.xlane.f32.xlu0 %v1100_v18  ;;  %1098 = vmax.xlane.f32.xlu1 %v1097_v19  ;;  %v803_v21 = vpop.f32.mrb[10].mxu0 }
 0x368   : > { %v2274_v22 = vpop.f32.mrb[11].mxu0  ;;  %v2280_v23 = vpop.f32.mrb[3].mxu1 }
 0x36d   : > { %v2825_v24 = vpop.f32.mrb[12].mxu0  ;;  %v2827_v25 = vpop.f32.mrb[4].mxu1 }
 0x36e   : > { %v2285_v26 = vpop.f32.mrb[13].mxu0  ;;  %v2291_v27 = vpop.f32.mrb[5].mxu1  ;;  %v1103_v28 = vsel %vm711_vm3, %v2825_v24, -inf  ;;  %v1106_v33 = vsel %vm711_vm3, %v2827_v25, -inf }
 0x36f   : > { %v947_v29 = vpop.f32.mrb[6].mxu1  ;;  %1104 = vmax.xlane.f32.xlu0 %v1103_v28  ;;  %v899_v30 = vpop.f32.mrb[14].mxu0 }
 0x370   : > { %v2286_v31 = vpop.f32.mrb[15].mxu0  ;;  %v2292_v32 = vpop.f32.mrb[7].mxu1 }
 0x373   : > { %1107 = vmax.xlane.f32.xlu0 %v1106_v33 }
 0x375   : > { %v2833_v34 = vpop.f32.mrb[16].mxu0  ;;  %v2835_v35 = vpop.f32.mrb[8].mxu1 }
 0x376   : > { %v2297_v36 = vpop.f32.mrb[17].mxu0  ;;  %v2303_v37 = vpop.f32.mrb[9].mxu1  ;;  %v1112_v38 = vsel %vm711_vm3, %v2835_v35, -inf  ;;  %v1109_v39 = vsel %vm711_vm3, %v2833_v34, -inf }
 0x377   : > { %v1043_v40 = vpop.f32.mrb[10].mxu1  ;;  %1113 = vmax.xlane.f32.xlu0 %v1112_v38  ;;  %1110 = vmax.xlane.f32.xlu1 %v1109_v39  ;;  %v995_v41 = vpop.f32.mrb[18].mxu0 }
 0x378   : > { %v2298_v42 = vpop.f32.mrb[19].mxu0  ;;  %v2304_v43 = vpop.f32.mrb[11].mxu1 }
 0x37d   : > { %v2841_v44 = vpop.f32.mrb[20].mxu0 }
 0x37e   : > { %v2309_v46 = vpop.f32.mrb[21].mxu0  ;;  %v1115_v61 = vsel %vm711_vm3, %v2841_v44, -inf }
 0x37f   : > { %v1091_v52 = vpop.f32.mrb[22].mxu0 }
 0x380   : > { %v2310_v54 = vpop.f32.mrb[23].mxu0 }
 0x388   : > { %1239 = vrot.lane.b32.xlu1 %v2757_v49, %s2559_s14 }
 0x389   : > { %v1096_v56 = vpop.xlane.xlu0 %1095 }
 0x38a   : > { %v1118_v57 = vsub.f32 %v752_v8, %v1096_v56 }
 0x38c   : > { %1287 = vrot.lane.b32.xlu1 %v2755_v48, %s2559_s14  ;;  %v1126_v58 = vmul.f32 1.442695, %v1118_v57 }
 0x38d   : > { %1190 = vrot.lane.b32.xlu0 %v2743_v45, %s2559_s14 }
 0x38e   : > { %2455 = vpow2.f32 %v1126_v58 }
 0x398   : > { %v2849_v59 = vpop.eup %2455 }
 0x399   : > { %v1142_v60 = vsel %vm711_vm3, %v2849_v59, 0.0 }
 0x3ac   : > { %1143 = vadd.xlane.f32.xlu0 %v1142_v60 }
 0x3b0   : > { %1116 = vmax.xlane.f32.xlu1 %v1115_v61 }
 0x3c1   : > { %1335 = vrot.lane.b32.xlu1 %v2761_v50, %s2559_s14 }
 0x3f4   : > { %v1102_v48 = vpop.xlane.xlu0 %1101  ;;  %v1099_v49 = vpop.xlane.xlu1 %1098 }
 0x3f5   : > { %v1120_v45 = vsub.f32 %v848_v15, %v1102_v48  ;;  %v1119_v62 = vsub.f32 %v800_v14, %v1099_v49 }
 0x3f7   : > { %v1130_v63 = vmul.f32 1.442695, %v1120_v45  ;;  %v1128_v0 = vmul.f32 1.442695, %v1119_v62 }
 0x3f9   : > { %2457 = vpow2.f32 %v1130_v63 }
 0x3fa   : > { %2459 = vpow2.f32 %v1128_v0 }
 0x3fc   : > { %v1105_v1 = vpop.xlane.xlu0 %1104 }
 0x3fd   : > { %v1121_v16 = vsub.f32 %v2825_v24, %v1105_v1 }
 0x3ff   : > { %v1132_v19 = vmul.f32 1.442695, %v1121_v16 }
 0x400   : > { %v1108_v4 = vpop.xlane.xlu0 %1107 }
 0x401   : > { %v1122_v15 = vsub.f32 %v2827_v25, %v1108_v4 }
 0x403   : > { %v2857_v5 = vpop.eup %2457  ;;  %v1134_v17 = vmul.f32 1.442695, %v1122_v15 }
 0x404   : > { %v2859_v6 = vpop.eup %2459  ;;  %v1114_v7 = vpop.xlane.xlu0 %1113  ;;  %v1148_v9 = vsel %vm711_vm3, %v2857_v5, 0.0 }
 0x405   : > { %v1111_v8 = vpop.xlane.xlu1 %1110  ;;  %1149 = vadd.xlane.f32.xlu0 %v1148_v9  ;;  %v1145_v50 = vsel %vm711_vm3, %v2859_v6, 0.0  ;;  %v1124_v18 = vsub.f32 %v2835_v35, %v1114_v7  ;;  %2461 = vpow2.f32 %v1134_v17 }
 0x406   : > { %1146 = vadd.xlane.f32.xlu1 %v1145_v50  ;;  %v1123_v20 = vsub.f32 %v2833_v34, %v1111_v8  ;;  %2463 = vpow2.f32 %v1132_v19 }
 0x407   : > { %v1138_v21 = vmul.f32 1.442695, %v1124_v18 }
 0x408   : > { %v1191_v10 = vpop.permute.xlu0 %1190  ;;  %v1136_v22 = vmul.f32 1.442695, %v1123_v20 }
 0x409   : > { %v1240_v12 = vpop.permute.xlu1 %1239  ;;  %v1197_v13 = vsel %vm1195_vm4, %v1191_v10, 0  ;;  %2465 = vpow2.f32 %v1138_v21 }
 0x40a   : > { %v1245_v14 = vsel %vm1195_vm4, %v1240_v12, 0  ;;  %2312 = vmatpush3.bf16.msra.mxu1 %v1197_v13  ;;  %2467 = vpow2.f32 %v1136_v22 }
 0x40b   : > { %2318 = vmatpush3.bf16.msra.mxu0 %v1245_v14  ;;  %2323 = vmatprep.subr.bf16.mxu1 %v2553_v11 }
 0x40c   : > { %2329 = vmatprep.subr.bf16.mxu0 %v2553_v11 }
 0x417   : > { %1431 = vrot.lane.b32.xlu1 %v2767_v53, %s2559_s14  ;;  %v2877_v53 = vpop.eup %2461 }
 0x418   : > { %v2879_v23 = vpop.eup %2463  ;;  %v1154_v24 = vsel %vm711_vm3, %v2877_v53, 0.0 }
 0x419   : > { %v2883_v26 = vpop.eup %2465  ;;  %v1151_v27 = vsel %vm711_vm3, %v2879_v23, 0.0 }
 0x41a   : > { %v2887_v28 = vpop.eup %2467  ;;  %v1160_v30 = vsel %vm711_vm3, %v2883_v26, 0.0 }
 0x41b   : > { %1383 = vrot.lane.b32.xlu0 %v2748_v47, %s2559_s14  ;;  %v1288_v47 = vpop.permute.xlu1 %1287  ;;  %v1157_v32 = vsel %vm711_vm3, %v2887_v28, 0.0 }
 0x41c   : > { %v1293_v37 = vsel %vm1195_vm4, %v1288_v47, 0 }
 0x439   : > { %v1144_v25 = vpop.xlane.xlu0 %1143 }
 0x43a   : > { %2469 = vrcp.f32 %v1144_v25  ;;  %1155 = vadd.xlane.f32.xlu0 %v1154_v24 }
 0x43b   : > { %1152 = vadd.xlane.f32.xlu1 %v1151_v27 }
 0x43d   : > { %v1117_v29 = vpop.xlane.xlu1 %1116 }
 0x43e   : > { %v1125_v31 = vsub.f32 %v2841_v44, %v1117_v29  ;;  %1161 = vadd.xlane.f32.xlu0 %v1160_v30 }
 0x43f   : > { %1158 = vadd.xlane.f32.xlu1 %v1157_v32 }
 0x440   : > { %v1140_v33 = vmul.f32 1.442695, %v1125_v31 }
 0x441   : > { %v1336_v40 = vpop.permute.xlu1 %1335 }
 0x442   : > { %2471 = vpow2.f32 %v1140_v33 }
 0x444   : > { %v2470_v34 = vpop.eup %2469 }
 0x445   : > { %v1174_v35 = vmul.f32 %v2470_v34, %v2849_v59 }
 0x447   : > { %v1182_v36 = vpack.c.bf16 %v1174_v35, %v1174_v35 }
 0x449   : > { %2314 = vmatmul.mubr.msk.bf16.vlgmr.msra.gmra.mrb[12].mxu1 %vm711_vm3, %v1182_v36 }
 0x44a   : > { %2324 = vmatpush3.bf16.msra.mxu1 %v1293_v37  ;;  %2325 = vmatprep.mubr.msk.bf16.mxu1 %vm2554_vm2, %v2553_v11  ;;  %v2439_v37 = vld [vmem:[%s2676_s25] sm:$0xff]  }
 0x44b   : > { %2335 = vmatprep.subr.bf16.mxu1 %v2553_v11 }
 0x44c   : > { %v2900_v38 = vpop.eup %2471 }
 0x44d   : > { %v1163_v39 = vsel %vm711_vm3, %v2900_v38, 0.0 }
 0x44e   : > { %1164 = vadd.xlane.f32.xlu1 %v1163_v39 }
 0x454   : > { %1479 = vrot.lane.b32.xlu0 %v2763_v51, %s2559_s14  ;;  %v1341_v51 = vsel %vm1195_vm4, %v1336_v40, 0 }
 0x45f   : > { %1527 = vrot.lane.b32.xlu1 %v2773_v55, %s2559_s14 }
 0x492   : > { %v1150_v41 = vpop.xlane.xlu0 %1149 }
 0x493   : > { %2473 = vrcp.f32 %v1150_v41  ;;  %v1147_v42 = vpop.xlane.xlu1 %1146 }
 0x494   : > { %2475 = vrcp.f32 %v1147_v42 }
 0x496   : > { %v1384_v54 = vpop.permute.xlu0 %1383 }
 0x497   : > { %v1389_v58 = vsel %vm1195_vm4, %v1384_v54, 0  ;;  %v1432_v55 = vpop.permute.xlu1 %1431 }
 0x498   : > { %v1437_v8 = vsel %vm1195_vm4, %v1432_v55, 0 }
 0x49d   : > { %v2474_v43 = vpop.eup %2473 }
 0x49e   : > { %v2476_v44 = vpop.eup %2475  ;;  %v1176_v46 = vmul.f32 %v2474_v43, %v2857_v5 }
 0x49f   : > { %v1175_v52 = vmul.f32 %v2476_v44, %v2859_v6 }
 0x4a0   : > { %v1184_v56 = vpack.c.bf16 %v1176_v46, %v1176_v46 }
 0x4a1   : > { %v1183_v57 = vpack.c.bf16 %v1175_v52, %v1175_v52 }
 0x4a2   : > { %2326 = vmatmul.mubr.msk.bf16.vlgmr.msra.gmra.mrb[16].mxu1 %vm711_vm3, %v1184_v56  ;;  %v2440_v56 = vld [vmem:[%s2676_s25 + $0x8] sm:$0xff]  }
 0x4a3   : > { %2320 = vmatmul.mubr.msk.bf16.vlgmr.msra.gmra.mrb[24].mxu0 %vm711_vm3, %v1183_v57  ;;  %2336 = vmatpush3.bf16.msra.mxu1 %v1389_v58 }
 0x4a4   : > { %2330 = vmatpush3.bf16.msra.mxu0 %v1341_v51  ;;  %2331 = vmatprep.mubr.msk.bf16.mxu0 %vm2554_vm2, %v2553_v11 }
 0x4a5   : > { %2337 = vmatprep.mubr.msk.bf16.mxu1 %vm2554_vm2, %v2553_v11  ;;  %2341 = vmatprep.subr.bf16.mxu0 %v2553_v11 }
 0x4a6   : > { %2347 = vmatprep.subr.bf16.mxu1 %v2553_v11 }
 0x4c7   : > { %v1156_v59 = vpop.xlane.xlu0 %1155 }
 0x4c8   : > { %2477 = vrcp.f32 %v1156_v59  ;;  %v1153_v60 = vpop.xlane.xlu1 %1152 }
 0x4c9   : > { %2479 = vrcp.f32 %v1153_v60 }
 0x4cb   : > { %v1162_v61 = vpop.xlane.xlu0 %1161 }
 0x4cc   : > { %2481 = vrcp.f32 %v1162_v61  ;;  %v1159_v48 = vpop.xlane.xlu1 %1158 }
 0x4cd   : > { %2483 = vrcp.f32 %v1159_v48 }
 0x4cf   : > { %v1480_v0 = vpop.permute.xlu0 %1479 }
 0x4d0   : > { %v1485_v7 = vsel %vm1195_vm4, %v1480_v0, 0 }
 0x4d2   : > { %v2478_v49 = vpop.eup %2477 }
 0x4d3   : > { %v2480_v45 = vpop.eup %2479  ;;  %v1178_v62 = vmul.f32 %v2478_v49, %v2877_v53 }
 0x4d4   : > { %v1177_v63 = vmul.f32 %v2480_v45, %v2879_v23 }
 0x4d5   : > { %v1186_v1 = vpack.c.bf16 %v1178_v62, %v1178_v62 }
 0x4d6   : > { %v2482_v4 = vpop.eup %2481  ;;  %v1185_v5 = vpack.c.bf16 %v1177_v63, %v1177_v63 }
 0x4d7   : > { %v2484_v6 = vpop.eup %2483  ;;  %2338 = vmatmul.mubr.msk.bf16.vlgmr.msra.gmra.mrb[20].mxu1 %vm711_vm3, %v1186_v1  ;;  %v1180_v9 = vmul.f32 %v2482_v4, %v2883_v26 }
 0x4d8   : > { %2332 = vmatmul.mubr.msk.bf16.vlgmr.msra.gmra.mrb[28].mxu0 %vm711_vm3, %v1185_v5  ;;  %2348 = vmatpush3.bf16.msra.mxu1 %v1485_v7  ;;  %v1179_v50 = vmul.f32 %v2484_v6, %v2887_v28 }
 0x4d9   : > { %2342 = vmatpush3.bf16.msra.mxu0 %v1437_v8  ;;  %2343 = vmatprep.mubr.msk.bf16.mxu0 %vm2554_vm2, %v2553_v11  ;;  %v1188_v12 = vpack.c.bf16 %v1180_v9, %v1180_v9 }
 0x4da   : > { %2349 = vmatprep.mubr.msk.bf16.mxu1 %vm2554_vm2, %v2553_v11  ;;  %2353 = vmatprep.subr.bf16.mxu0 %v2553_v11  ;;  %v1187_v13 = vpack.c.bf16 %v1179_v50, %v1179_v50 }
 0x4db   : > { %v1165_v10 = vpop.xlane.xlu1 %1164  ;;  %2359 = vmatprep.subr.bf16.mxu1 %v2553_v11 }
 0x4dc   : > { %2485 = vrcp.f32 %v1165_v10 }
 0x4df   : > { %2350 = vmatmul.mubr.msk.bf16.vlgmr.msra.gmra.mrb[24].mxu1 %vm711_vm3, %v1188_v12  ;;  %v1528_v14 = vpop.permute.xlu1 %1527 }
 0x4e0   : > { %2344 = vmatmul.mubr.msk.bf16.vlgmr.msra.gmra.mrb[32].mxu0 %vm711_vm3, %v1187_v13  ;;  %v1533_v15 = vsel %vm1195_vm4, %v1528_v14, 0  ;;  %2363 = vmatprep.mubr.msk.bf16.mxu1 %vm2554_vm2, %v2553_v11  ;;  %v2177_v14 = vld [vmem:[%s3091_s13] ss:$0 sm:$0xff] }
 0x4e1   : > { %2354 = vmatpush3.bf16.msra.mxu0 %v1533_v15  ;;  %2355 = vmatprep.mubr.msk.bf16.mxu0 %vm2554_vm2, %v2553_v11 }
 0x4e2   : > { %2367 = vmatprep.subr.bf16.mxu0 %v2553_v11  ;;  %2360 = vmatpush3.bf16.msra.mxu1 %v2439_v37 }
 0x4e3   : > { %2361 = vmatprep.subr.bf16.mxu1 %v2553_v11 }
 0x4e6   : > { %v2486_v16 = vpop.eup %2485  ;;  %2362 = vmatpush3.bf16.msra.mxu1 %v2440_v56 }
 0x4e7   : > { %v1181_v17 = vmul.f32 %v2486_v16, %v2900_v38  ;;  %2375 = vmatprep.subr.bf16.mxu1 %v2553_v11 }
 0x4e9   : > { %v1189_v18 = vpack.c.bf16 %v1181_v17, %v1181_v17 }
 0x4eb   : > { %2356 = vmatmul.mubr.msk.bf16.vlgmr.msra.gmra.mrb[36].mxu0 %vm711_vm3, %v1189_v18 }
 0x4ec   : > { %2371 = vmatprep.mubr.msk.bf16.mxu0 %vm2554_vm2, %v2553_v11 }
 0x51c   : > { %v2946_v19 = vpop.f32.mrb[12].mxu1 }
 0x51d   : > { %v2315_v20 = vpop.f32.mrb[13].mxu1  ;;  %v1575_v5 = vpack.c.bf16 %v2946_v19, %v2946_v19 }
 0x51e   : > { %v1236_v21 = vpop.f32.mrb[14].mxu1 }
 0x51f   : > { %v2316_v22 = vpop.f32.mrb[15].mxu1 }
 0x575   : > { %v1329_v53 = vpop.f32.mrb[16].mxu1 }
 0x576   : > { %v1281_v23 = vpop.f32.mrb[24].mxu0  ;;  %v2327_v47 = vpop.f32.mrb[17].mxu1  ;;  %v1577_v58 = vpack.c.bf16 %v1329_v53, %v1329_v53 }
 0x577   : > { %v1576_v25 = vpack.c.bf16 %v1281_v23, %v1281_v23  ;;  %v2321_v24 = vpop.f32.mrb[25].mxu0  ;;  %v1332_v26 = vpop.f32.mrb[18].mxu1 }
 0x578   : > { %v1284_v27 = vpop.f32.mrb[26].mxu0  ;;  %v2328_v28 = vpop.f32.mrb[19].mxu1  ;;  %v2441_v24 = vld [vmem:[%s2689_s18] sm:$0xff]   ;;  %v2442_v26 = vld [vmem:[%s2689_s18 + $0x8] sm:$0xff]  }
 0x579   : > { %1584 = vrot.lane.b32.xlu0 %v1576_v25, %s2560_s28  ;;  %v2322_v29 = vpop.f32.mrb[27].mxu0  ;;  %2368 = vmatpush3.bf16.msra.mxu0 %v2441_v24  ;;  %v2443_v27 = vld [vmem:[%s2695_s24] sm:$0xff]  }
 0x57a   : > { %2369 = vmatprep.subr.bf16.mxu0 %v2553_v11 }
 0x57d   : > { %2370 = vmatpush3.bf16.msra.mxu0 %v2442_v26 }
 0x5aa   : > { %v1425_v30 = vpop.f32.mrb[20].mxu1 }
 0x5ab   : > { %v1377_v31 = vpop.f32.mrb[28].mxu0  ;;  %v2339_v32 = vpop.f32.mrb[21].mxu1  ;;  %v1579_v62 = vpack.c.bf16 %v1425_v30, %v1425_v30 }
 0x5ac   : > { %v2333_v33 = vpop.f32.mrb[29].mxu0  ;;  %v1428_v34 = vpop.f32.mrb[22].mxu1  ;;  %v1578_v48 = vpack.c.bf16 %v1377_v31, %v1377_v31 }
 0x5ad   : > { %v1380_v35 = vpop.f32.mrb[30].mxu0  ;;  %v2340_v36 = vpop.f32.mrb[23].mxu1 }
 0x5ae   : > { %v2334_v38 = vpop.f32.mrb[31].mxu0 }
 0x5b2   : > { %v1521_v39 = vpop.f32.mrb[24].mxu1 }
 0x5b3   : > { %v1473_v40 = vpop.f32.mrb[32].mxu0  ;;  %v1581_v41 = vpack.c.bf16 %v1521_v39, %v1521_v39  ;;  %v2351_v42 = vpop.f32.mrb[25].mxu1 }
 0x5b4   : > { %v1580_v43 = vpack.c.bf16 %v1473_v40, %v1473_v40  ;;  %v2345_v44 = vpop.f32.mrb[33].mxu0  ;;  %v1524_v46 = vpop.f32.mrb[26].mxu1 }
 0x5b5   : > { %v1476_v52 = vpop.f32.mrb[34].mxu0  ;;  %v2352_v54 = vpop.f32.mrb[27].mxu1  ;;  %1605 = vrot.lane.b32.xlu1 %v1581_v41, %s2561_s3 }
 0x5b6   : > { %1602 = vrot.lane.b32.xlu0 %v1580_v43, %s2560_s28  ;;  %v2346_v57 = vpop.f32.mrb[35].mxu0  ;;  %v2181_v54 = vld [vmem:[%s555_s30] ss:$0 sm:$0xff] }
 0x5ba   : > { %1587 = vrot.lane.b32.xlu0 %v1577_v58, %s2561_s3 }
 0x5be   : > { %v1569_v51 = vpop.f32.mrb[36].mxu0 }
 0x5bf   : > { %v1582_v55 = vpack.c.bf16 %v1569_v51, %v1569_v51  ;;  %v2357_v59 = vpop.f32.mrb[37].mxu0 }
 0x5c0   : > { %v1572_v60 = vpop.f32.mrb[38].mxu0 }
 0x5c1   : > { %1608 = vrot.lane.b32.xlu1 %v1582_v55, %s2562_s15  ;;  %v2358_v61 = vpop.f32.mrb[39].mxu0  ;;  %v2182_v55 = vld [vmem:[%s558_s12] ss:$0 sm:$0xff] }
 0x5c5   : > { %1590 = vrot.lane.b32.xlu1 %v1578_v48, %s2562_s15 }
 0x5eb   : > { %v1585_v49 = vpop.permute.xlu0 %1584 }
 0x5ec   : > { %v1594_v8 = vsel %vm711_vm3, %v1575_v5, %v1585_v49  ;;  %v2444_v49 = vld [vmem:[%s2695_s24 + $0x8] sm:$0xff]  }
 0x627   : > { %v1606_v63 = vpop.permute.xlu1 %1605 }
 0x628   : > { %v1603_v45 = vpop.permute.xlu0 %1602 }
 0x629   : > { %v1612_v0 = vsel %vm711_vm3, %v1579_v62, %v1603_v45  ;;  %v2445_v45 = vld [vmem:[%s2695_s24 + $0x10] sm:$0xff]   ;;  %v2446_v62 = vld [vmem:[%s2695_s24 + $0x18] sm:$0xff]  }
 0x62a   : > { %v1614_v1 = vsel %vm1595_vm5, %v1612_v0, %v1606_v63  ;;  %v2447_v63 = vld [vmem:[%s2695_s24 + $0x20] sm:$0xff]   ;;  %v2448_v0 = vld [vmem:[%s2695_s24 + $0x28] sm:$0xff]  }
 0x62c   : > { %v1588_v6 = vpop.permute.xlu0 %1587 }
 0x62d   : > { %v1597_v9 = vsel %vm1595_vm5, %v1594_v8, %v1588_v6 }
 0x633   : > { %v1609_v4 = vpop.permute.xlu1 %1608 }
 0x634   : > { %v1616_v7 = vsel %vm1598_vm6, %v1614_v1, %v1609_v4  ;;  %v2449_v1 = vld [vmem:[%s2695_s24 + $0x30] sm:$0xff]   ;;  %v2450_v4 = vld [vmem:[%s2695_s24 + $0x38] sm:$0xff]  }
 0x635   : > { %v1618_v50 = vrot.slane %v1616_v7, 4 }
 0x637   : > { %v1591_v10 = vpop.permute.xlu1 %1590 }
 0x638   : > { %v1600_v12 = vsel %vm1598_vm6, %v1597_v9, %v1591_v10 }
 0x639   : > { %v1620_v13 = vsel %vm1195_vm4, %v1600_v12, %v1618_v50 }
 0x63a   : > { %2364 = vmatmul.mubr.msk.bf16.vlgmr.msra.gmra.mrb[28].mxu1 %vm584_vm1, %v1620_v13 }
 0x63b   : > { %2391 = vmatprep.mubr.msk.bf16.mxu1 %vm2554_vm2, %v2553_v11  ;;  %2376 = vmatpush3.bf16.msra.mxu1 %v2443_v27 }
 0x63c   : > { %2377 = vmatprep.subr.bf16.mxu1 %v2553_v11 }
 0x63f   : > { %2378 = vmatpush3.bf16.msra.mxu1 %v2444_v49 }
 0x640   : > { %2379 = vmatprep.subr.bf16.mxu1 %v2553_v11 }
 0x643   : > { %2380 = vmatpush3.bf16.msra.mxu1 %v2445_v45 }
 0x644   : > { %2381 = vmatprep.subr.bf16.mxu1 %v2553_v11 }
 0x647   : > { %2382 = vmatpush3.bf16.msra.mxu1 %v2446_v62 }
 0x648   : > { %2383 = vmatprep.subr.bf16.mxu1 %v2553_v11 }
 0x64b   : > { %2384 = vmatpush3.bf16.msra.mxu1 %v2447_v63 }
 0x64c   : > { %2385 = vmatprep.subr.bf16.mxu1 %v2553_v11 }
 0x64f   : > { %2386 = vmatpush3.bf16.msra.mxu1 %v2448_v0 }
 0x650   : > { %2387 = vmatprep.subr.bf16.mxu1 %v2553_v11 }
 0x653   : > { %2388 = vmatpush3.bf16.msra.mxu1 %v2449_v1 }
 0x654   : > { %2389 = vmatprep.subr.bf16.mxu1 %v2553_v11 }
 0x657   : > { %2390 = vmatpush3.bf16.msra.mxu1 %v2450_v4 }
 0x70d   : > { %v1680_v15 = vpop.f32.mrb[28].mxu1 }
 0x70e   : > { %v1681_v16 = vadd.f32 %v2177_v14, %v1680_v15  ;;  %v2365_v17 = vpop.f32.mrb[29].mxu1 }
 0x70f   : > { %v1683_v18 = vpop.f32.mrb[30].mxu1 }
 0x710   : > { %v2968_v19 = vadd.f32 %v1681_v16, %v2704_v2  ;;  %v1684_v20 = vadd.f32 %v2177_v14, %v1683_v18  ;;  %v2366_v21 = vpop.f32.mrb[31].mxu1 }
 0x712   : > { %v2971_v22 = vadd.f32 %v1684_v20, %v2706_v3  ;;  %v1691_v53 = vsel %vm584_vm1, %v2968_v19, 0.0  ;;  %v1697_v23 = vmul.f32 %v2968_v19, %v2968_v19 }
 0x713   : > { %1692 = vadd.xlane.f32.xlu0 %v1691_v53 }
 0x714   : > { %v1694_v47 = vsel %vm584_vm1, %v2971_v22, 0.0  ;;  %v1699_v2 = vsel %vm584_vm1, %v1697_v23, 0.0  ;;  %v1698_v25 = vmul.f32 %v2971_v22, %v2971_v22 }
 0x715   : > { %1695 = vadd.xlane.f32.xlu1 %v1694_v47 }
 0x716   : > { %v1702_v3 = vsel %vm584_vm1, %v1698_v25, 0.0 }
 0x717   : > { %1700 = vadd.xlane.f32.xlu0 %v1699_v2 }
 0x71b   : > { %1703 = vadd.xlane.f32.xlu0 %v1702_v3 }
 0x7a0   : > { %v1693_v28 = vpop.xlane.xlu0 %1692 }
 0x7a1   : > { %v1705_v29 = vmul.f32 0.03125, %v1693_v28 }
 0x7a2   : > { %v1696_v30 = vpop.xlane.xlu1 %1695 }
 0x7a3   : > { %v1709_v32 = vmul.f32 %v1705_v29, %v1705_v29  ;;  %v1706_v33 = vmul.f32 0.03125, %v1696_v30  ;;  %v1715_v44 = vsub.f32 %v2968_v19, %v1705_v29 }
 0x7a4   : > { %v1701_v31 = vpop.xlane.xlu0 %1700 }
 0x7a5   : > { %v1707_v34 = vmul.f32 0.03125, %v1701_v31  ;;  %v1710_v37 = vmul.f32 %v1706_v33, %v1706_v33  ;;  %v1716_v56 = vsub.f32 %v2971_v22, %v1706_v33 }
 0x7a7   : > { %v1711_v35 = vsub.f32 %v1707_v34, %v1709_v32 }
 0x7a8   : > { %v1704_v36 = vpop.xlane.xlu0 %1703 }
 0x7a9   : > { %v1713_v38 = vmax.f32 %v1711_v35, 0.0  ;;  %v1708_v39 = vmul.f32 0.03125, %v1704_v36 }
 0x7ab   : > { %v1717_v40 = vadd.f32 1e-05, %v1713_v38  ;;  %v1712_v41 = vsub.f32 %v1708_v39, %v1710_v37 }
 0x7ad   : > { %2487 = vrsqrt.f32 %v1717_v40  ;;  %v1714_v42 = vmax.f32 %v1712_v41, 0.0 }
 0x7af   : > { %v1718_v43 = vadd.f32 1e-05, %v1714_v42 }
 0x7b1   : > { %2489 = vrsqrt.f32 %v1718_v43 }
 0x7b7   : > { %v2488_v46 = vpop.eup %2487 }
 0x7b8   : > { %v1721_v52 = vmul.f32 %v2488_v46, %v1715_v44 }
 0x7ba   : > { %v1729_v51 = vmul.f32 %v2181_v54, %v1721_v52 }
 0x7bb   : > { %v2490_v57 = vpop.eup %2489 }
 0x7bc   : > { %v1722_v58 = vmul.f32 %v2490_v57, %v1716_v56  ;;  %v1737_v60 = vadd.f32 %v2182_v55, %v1729_v51 }
 0x7be   : > { %v1730_v59 = vmul.f32 %v2181_v54, %v1722_v58 }
 0x7c0   : > { %v1738_v61 = vadd.f32 %v2182_v55, %v1730_v59  ;;  %v2195_v59 = vld [vmem:[%s3079_s10] ss:$0 sm:$0xff] (!%p2194_p6) }
 0x7c2   : > { %v1739_v48 = vpack.c.bf16 %v1738_v61, %v1737_v60  ;;  %v2196_v61 = vld [vmem:[%s3080_s11] ss:$0 sm:$0xff] (!%p2194_p6) }
 0x7c4   : > { %2372 = vmatmul.mubr.msk.bf16.vlgmr.msra.gmra.mrb[40].mxu0 %vm584_vm1, %v1739_v48 }
 0x897   : > { %v1793_v5 = vpop.f32.mrb[40].mxu0 }
 0x898   : > { %v1802_v6 = vmul.f32 0.044715, %v1793_v5  ;;  %v2373_v7 = vpop.f32.mrb[41].mxu0  ;;  %v1800_v53 = vmul.f32 0.5, %v1793_v5 }
 0x899   : > { %v1796_v8 = vpop.f32.mrb[42].mxu0 }
 0x89a   : > { %v1804_v9 = vmul.f32 %v1802_v6, %v1793_v5  ;;  %v1803_v50 = vmul.f32 0.044715, %v1796_v8  ;;  %v2374_v10 = vpop.f32.mrb[43].mxu0  ;;  %v1801_v23 = vmul.f32 0.5, %v1796_v8 }
 0x89c   : > { %v1806_v12 = vmul.f32 %v1804_v9, %v1793_v5  ;;  %v1805_v13 = vmul.f32 %v1803_v50, %v1796_v8 }
 0x89e   : > { %v1808_v14 = vadd.f32 %v1806_v12, %v1793_v5  ;;  %v1807_v15 = vmul.f32 %v1805_v13, %v1796_v8 }
 0x8a0   : > { %v1810_v16 = vmul.f32 0.7978846, %v1808_v14  ;;  %v1809_v17 = vadd.f32 %v1807_v15, %v1796_v8 }
 0x8a2   : > { %2491 = vtanh.f32 %v1810_v16  ;;  %v1811_v18 = vmul.f32 0.7978846, %v1809_v17 }
 0x8a4   : > { %2493 = vtanh.f32 %v1811_v18 }
 0x8ac   : > { %v2492_v20 = vpop.eup %2491 }
 0x8ad   : > { %v1814_v21 = vadd.f32 1.0, %v2492_v20 }
 0x8ae   : > { %v2494_v11 = vpop.eup %2493 }
 0x8af   : > { %v1815_v47 = vadd.f32 1.0, %v2494_v11  ;;  %v1816_v2 = vmul.f32 %v1814_v21, %v1800_v53 }
 0x8b1   : > { %v1817_v25 = vmul.f32 %v1815_v47, %v1801_v23 }
 0x8b3   : > { %v1818_v3 = vpack.c.bf16 %v1817_v25, %v1816_v2 }
 0x8b5   : > { %2392 = vmatmul.mubr.bf16.vlgmr.msra.gmra.mrb[32].mxu1 %v1818_v3 }
 0x987   : > { %1931 = sbr.rel (%p2194_p6) target bundleno = 2618 (0xa3a), region = 76 }
 0x988   : > { %v1917_v24 = vpop.f32.mrb[32].mxu1 }
 0x989   : > { %v1924_v26 = vadd.f32 %v1917_v24, %v2968_v19  ;;  %v2393_v27 = vpop.f32.mrb[33].mxu1 }
 0x98a   : > { %v1920_v28 = vpop.f32.mrb[34].mxu1 }
 0x98b   : > { %1926 = vst.msk [vmem:[#allocation2] sm:$0xff] %vm584_vm1, %v1924_v26  ;;  %v1925_v29 = vadd.f32 %v1920_v28, %v2971_v22  ;;  %v2394_v30 = vpop.f32.mrb[35].mxu1  ;;  %v1934_v31 = vsel (!%p2194_p6), %vm584_vm1, %v1924_v26, 0.0  ;;  %v1940_v32 = vmul.f32 (!%p2194_p6), %v1924_v26, %v1924_v26 }
 0x98c   : > { %1935 = vadd.xlane.f32.xlu0 (!%p2194_p6), %v1934_v31 }
 0x98d   : > { %1927 = vst.msk [vmem:[#allocation2 + $0x8] sm:$0xff] %vm584_vm1, %v1925_v29  ;;  %v1941_v33 = vmul.f32 (!%p2194_p6), %v1925_v29, %v1925_v29  ;;  %v1942_v34 = vsel (!%p2194_p6), %vm584_vm1, %v1940_v32, 0.0  ;;  %v1937_v19 = vsel (!%p2194_p6), %vm584_vm1, %v1925_v29, 0.0 }
 0x98e   : > { %1943 = vadd.xlane.f32.xlu1 %v1942_v34 }
 0x98f   : > { %v1945_v35 = vsel %vm584_vm1, %v1941_v33, 0.0 }
 0x990   : > { %1938 = vadd.xlane.f32.xlu0 %v1937_v19 }
 0x992   : > { %1946 = vadd.xlane.f32.xlu1 %v1945_v35 }
 0xa19   : > { %v1936_v22 = vpop.xlane.xlu0 %1935 }
 0xa1a   : > { %v1948_v36 = vmul.f32 0.03125, %v1936_v22 }
 0xa1b   : > { %v1944_v37 = vpop.xlane.xlu1 %1943 }
 0xa1c   : > { %v1952_v38 = vmul.f32 %v1948_v36, %v1948_v36  ;;  %v1950_v39 = vmul.f32 0.03125, %v1944_v37  ;;  %v1958_v51 = vsub.f32 %v1924_v26, %v1948_v36 }
 0xa1d   : > { %v1939_v40 = vpop.xlane.xlu0 %1938 }
 0xa1e   : > { %v1954_v41 = vsub.f32 %v1950_v39, %v1952_v38  ;;  %v1949_v42 = vmul.f32 0.03125, %v1939_v40 }
 0xa1f   : > { %v1947_v43 = vpop.xlane.xlu1 %1946 }
 0xa20   : > { %v1956_v44 = vmax.f32 %v1954_v41, 0.0  ;;  %v1953_v46 = vmul.f32 %v1949_v42, %v1949_v42  ;;  %v1951_v52 = vmul.f32 0.03125, %v1947_v43  ;;  %v1959_v49 = vsub.f32 %v1925_v29, %v1949_v42 }
 0xa22   : > { %v1960_v54 = vadd.f32 1e-05, %v1956_v44  ;;  %v1955_v56 = vsub.f32 %v1951_v52, %v1953_v46 }
 0xa24   : > { %2495 = vrsqrt.f32 %v1960_v54  ;;  %v1957_v57 = vmax.f32 %v1955_v56, 0.0 }
 0xa26   : > { %v1961_v58 = vadd.f32 1e-05, %v1957_v57 }
 0xa28   : > { %2497 = vrsqrt.f32 %v1961_v58 }
 0xa2e   : > { %v2496_v55 = vpop.eup %2495 }
 0xa2f   : > { %v1964_v60 = vmul.f32 %v2496_v55, %v1958_v51 }
 0xa31   : > { %v1972_v48 = vmul.f32 %v2195_v59, %v1964_v60 }
 0xa32   : > { %v2498_v45 = vpop.eup %2497 }
 0xa33   : > { %v1980_v62 = vadd.f32 %v2196_v61, %v1972_v48  ;;  %v1965_v63 = vmul.f32 %v2498_v45, %v1959_v49 }
 0xa35   : > { %1982 = vst.msk [vmem:[#allocation3] sm:$0xff] %vm584_vm1, %v1980_v62  ;;  %v1973_v0 = vmul.f32 %v2195_v59, %v1965_v63 }
 0xa37   : > { %v1981_v1 = vadd.f32 %v2196_v61, %v1973_v0 }
 0xa39   : > { %1983 = vst.msk [vmem:[#allocation3 + $0x8] sm:$0xff] %vm584_vm1, %v1981_v1 }
 0xa3a PF: > { %s3092_s24 = sadd.s32 4294967295, %s2551_s23   ;;  %s2563_s22 = smov [#allocation3]  }
 0xa3b   : > { %p3033_p7 = scmp.eq.s32.totalorder %s3092_s24, 1  ;;  %s1993_s29 = sshll.u32 %s2563_s22, 4  ;;  %s1994_s29 = int_to_ptr.vmem [resolvable:$true] %s1993_s29 }
 0xa3c   : > { %s2499_s14 = scalar_lea.vmem %s1994_s29, 256  ;;  %p2506_p11 = scmp.lt.s32.totalorder %s1994_s29, %s1994_s29 }
 0xa3d   : > { %p2500_p8 = scmp.ne.s32.totalorder %s1994_s29, %s2499_s14  ;;  %p2507_p12 = scmp.lt.s32.totalorder %s2499_s14, %s2499_s14 }
 0xa3f   : > { %p2501_p9 = pnand %p2500_p8, %p3033_p7  ;;  %p2508_p13 = por %p2507_p12, %p2506_p11 }
 0xa41   : > { %p2502_p10 = pneg %p2501_p9 }
 0xa43   : > { %p2509_p0 = pnand %p2508_p13, %p2502_p10 }
 0xa45   : > { %2512 = shalt.err (!%p2509_p0)
}
 0xa46   : > { %s3094_s25 = sld [smem:[#allocation9_spill]] }
 0xa4c   : > { %s2513_s27 = scalar_lea.hbm %s3094_s25, 256 }
 0xa4d   : > { %p2514_p1 = scmp.ne.s32.totalorder %s3094_s25, %s2513_s27  ;;  %p2519_p4 = scmp.lt.u32.totalorder %s2513_s27, %s3094_s25 }
 0xa4f   : > { %p2515_p2 = pnand %p2514_p1, %p3033_p7 }
 0xa51   : > { %p2516_p3 = pneg %p2515_p2 }
 0xa53   : > { %p2521_p5 = pnand %p2519_p4, %p2516_p3 }
 0xa55   : > { %2524 = shalt.err (!%p2521_p5)
}
 0xa56   : > { %s2564_s19 = smov 128  }
 0xa57   : > { %2396 = dma.vmem_to_hbm [thread:$0]  (%p3033_p7), %s1994_s29, 256, %s3094_s25, [#allocation4], %s2564_s19, %s2564_s19, %s2560_s28  }
 0xa58   : > { %2538 = dma.done.wait (%p3033_p7), [#allocation4], 256  }
 0xa59   : > { %2540 = vsyncadd (%p3033_p7), [#allocation4], 4294967040 }
 0xa5a PF: > { %s23_s23 = sadd.s32 1, %s2551_s23   ;;  %s3095_s21 = sld [smem:[#allocation6_spill]] }
 0xa5b   : > { %p20_p6 = scmp.ge.s32.totalorder %s23_s23, 4   ;;  %s3096_s22 = sld [smem:[#allocation7_spill]] }
 0xa5d   :  { %22 = sbr.rel (!%p20_p6) target bundleno = 5 (0x5), region = 131 }
 0xa64   :  { %2009 = vsyncpa [#allocation4], 1 }
 0xa65   :  { %2011 = vsyncpa [#allocation4 + $0x1], 1 }

</bundles_post_ra>
